<compile_context>
chip_gen: v7x
topology: tpu7x:2x2x1
jax: 0.10.0
libtpu: 0.0.40
codegen_flags: <defaults>
</compile_context>

<pallas_src>
import functools

import jax
import jax.numpy as jnp
import numpy as np
from jax import lax
from jax.experimental import pallas as pl
from jax.experimental.pallas import tpu as pltpu


def _sepconv2d_kernel(x_ref, dww_ref, gamma_ref, beta_ref, pww_ref, pwb_ref,
                      o_ref, xp_ref, dense_ref, *,
                      N, C, O, H, W, K, padding, dilation,
                      Hp, Wp, Hout, Wout, eps):
    R = N * C                                  # rows: r = n*C + c (natural NCHW order)
    Lacc = (Hout - 1) * Wp + Wout              # flat (padded-pitch) accumulator length
    Ld = Hout * Wout                           # dense output spatial length

    # ---- in-kernel zero padding: (R, H*W) -> flat (R, Hp*Wp), row pitch Wp -------------
    # Only the pad border is zeroed; interior data is copied as H contiguous row strips.
    if padding > 0:
        P = padding
        # top P pad rows + left pad of interior row 0 (contiguous)
        xp_ref[:, pl.ds(0, P * (Wp + 1))] = jnp.zeros((R, P * (Wp + 1)), jnp.float32)
        for i in range(H):
            row0 = (P + i) * Wp
            xp_ref[:, pl.ds(row0 + P, W)] = x_ref[:, pl.ds(i * W, W)].astype(jnp.float32)
            if i < H - 1:
                # right pad of row i + left pad of row i+1 (contiguous)
                xp_ref[:, pl.ds(row0 + P + W, 2 * P)] = jnp.zeros((R, 2 * P), jnp.float32)
            else:
                # right pad of last interior row + bottom P pad rows (contiguous)
                tail = P * (Wp + 1)
                xp_ref[:, pl.ds(row0 + P + W, tail)] = jnp.zeros((R, tail), jnp.float32)
        xpad = xp_ref[...]                                 # single (R, Hp*Wp) load
    else:
        xpad = x_ref[...].astype(jnp.float32)              # Hp == H, Wp == W

    # ---- depthwise conv: K*K shift-and-accumulate taps, all in registers (pure VPU) ----
    taps = dww_ref[...].astype(jnp.float32)                # (R, K*K) -- hoisted single load
    acc = None
    for kh in range(K):
        for kw in range(K):
            t = kh * K + kw
            off = (kh * Wp + kw) * dilation
            win = xpad[:, off:off + Lacc]                  # (R, Lacc) in-register lane slice
            w_t = taps[:, t:t + 1]                         # (R, 1) per-row (= per-channel) tap
            term = win * w_t
            acc = term if acc is None else acc + term
    # NOTE: depthwise bias intentionally omitted -- a per-channel constant is exactly
    # cancelled by the training-mode BatchNorm mean subtraction that follows.

    # ---- compact padded-pitch rows (width Wp) straight into dense rows (width Wout) ----
    if Wp == Wout:
        dense_ref[...] = acc                               # no pitch change: one full store
    else:
        for i in range(Hout):
            dense_ref[:, pl.ds(i * Wout, Wout)] = acc[:, i * Wp:i * Wp + Wout]

    # ---- BatchNorm2d batch stats (training mode, biased variance), wide block ops ------
    blks = [dense_ref[pl.ds(n * C, C), :] for n in range(N)]      # N x (C, Ld)
    ch_sum = blks[0]
    ch_sq = blks[0] * blks[0]
    for n in range(1, N):
        ch_sum = ch_sum + blks[n]
        ch_sq = ch_sq + blks[n] * blks[n]
    inv_cnt = 1.0 / float(N * Ld)
    s1 = jnp.sum(ch_sum, axis=1, keepdims=True)            # (C, 1)
    s2 = jnp.sum(ch_sq, axis=1, keepdims=True)             # (C, 1)
    mean = s1 * inv_cnt
    var = jnp.maximum(s2 * inv_cnt - mean * mean, 0.0)
    # TODO(synk): single-pass variance can cancel at production sizes; switch to a
    # mean-shifted second pass / Welford combine when the row-block grid is added.
    inv_std = lax.rsqrt(var + eps)
    scale_col = inv_std * gamma_ref[...]                   # (C, 1)
    shift_col = beta_ref[...] - mean * scale_col           # (C, 1)

    # ---- BN normalize: wide (C, Ld) FMA per image, written back into dense_ref ---------
    for n in range(N):
        dense_ref[pl.ds(n * C, C), :] = blks[n] * scale_col + shift_col

    # ---- 1x1 pointwise conv: (O, Ld)-wide broadcast FMAs, one lane-dense output store ---
    pw = pww_ref[...]                                      # (O, C)
    pwb_col = pwb_ref[...]                                 # (O, 1)
    pieces = []
    for n in range(N):
        out_n = pwb_col                                    # (O, 1) -> broadcasts to (O, Ld)
        for c in range(C):
            row = dense_ref[pl.ds(n * C + c, 1), :]        # (1, Ld) normalized channel row
            out_n = out_n + row * pw[:, c:c + 1]           # (O, Ld) broadcast FMA
        pieces.append(out_n)
    out_all = jnp.concatenate(pieces, axis=0) if N > 1 else pieces[0]
    o_ref[...] = out_all.astype(o_ref.dtype)               # single (N*O, Ld) lane-dense store


def sep_conv2d(x_nchw, dw_w, dw_b, gamma, beta, pw_w, pw_b, *,
               stride=1, padding=0, dilation=1, eps=1e-5):
    """Fused SepConv2d forward.  Weights are PyTorch-shaped:
       dw_w (C,1,K,K), dw_b (C,), gamma/beta (C,), pw_w (O,C,1,1), pw_b (O,)."""
    if stride != 1:
        # TODO(synk): stride > 1 needs strided tap reads (pl.ds(..., stride=s)).
        raise NotImplementedError("Pallas SepConv2d kernel currently supports stride=1 only")
    del dw_b  # exactly cancelled by training-mode BatchNorm (see kernel note)

    N, C, H, W = x_nchw.shape
    K = dw_w.shape[-1]
    O = pw_w.shape[0]
    Hp, Wp = H + 2 * padding, W + 2 * padding
    Hout = Hp - dilation * (K - 1)
    Wout = Wp - dilation * (K - 1)
    assert Hout > 0 and Wout > 0
    R = N * C
    Ld = Hout * Wout

    # Free, layout-preserving reshapes only (no transpose / pad op on the big tensor).
    x2 = x_nchw.reshape(R, H * W)
    dww = jnp.tile(dw_w[:, 0].reshape(C, K * K), (N, 1)).astype(jnp.float32)   # (R, K*K)
    gamma_col = gamma.reshape(C, 1).astype(jnp.float32)
    beta_col = beta.reshape(C, 1).astype(jnp.float32)
    pww2 = pw_w[:, :, 0, 0].astype(jnp.float32)                                # (O, C)
    pwb2 = pw_b.reshape(O, 1).astype(jnp.float32)

    kernel = functools.partial(
        _sepconv2d_kernel, N=N, C=C, O=O, H=H, W=W, K=K,
        padding=padding, dilation=dilation, Hp=Hp, Wp=Wp, Hout=Hout, Wout=Wout, eps=eps)

    itemsize = jnp.dtype(x_nchw.dtype).itemsize
    flops = 2 * N * Ld * C * (K * K + O) + 8 * N * Ld * C
    bytes_accessed = 4 * (x2.size + dww.size + pww2.size + pwb2.size + 2 * C) \
        + N * O * Ld * itemsize
    scratch_bytes = 4 * (R * Hp * Wp + R * Ld)
    vmem_limit = int(min(64 * 1024 * 1024,
                         max(32 * 1024 * 1024,
                             2 * bytes_accessed + scratch_bytes + (4 << 20))))

    # TODO(synk): at production sizes add a grid over row-blocks of N*C (two-phase BN:
    # partial sum/sumsq pass, then normalize + pointwise) with
    # dimension_semantics=("parallel", ...) so v7x's 2nd TensorCore / 64 MiB VMEM are used,
    # and move the channel-mixing pointwise onto the MXU once C, O >= ~64.
    out2 = pl.pallas_call(
        kernel,
        out_shape=jax.ShapeDtypeStruct((N * O, Ld), x_nchw.dtype),
        in_specs=[
            pl.BlockSpec(memory_space=pltpu.MemorySpace.VMEM),   # x2    (lane-dense rows)
            pl.BlockSpec(memory_space=pltpu.MemorySpace.VMEM),   # dww   (per-row taps)
            pl.BlockSpec(memory_space=pltpu.MemorySpace.VMEM),   # gamma (C,1)
            pl.BlockSpec(memory_space=pltpu.MemorySpace.VMEM),   # beta  (C,1)
            pl.BlockSpec(memory_space=pltpu.MemorySpace.VMEM),   # pw    (O,C)
            pl.BlockSpec(memory_space=pltpu.MemorySpace.VMEM),   # pwb   (O,1)
        ],
        out_specs=pl.BlockSpec(memory_space=pltpu.MemorySpace.VMEM),
        scratch_shapes=[
            pltpu.VMEM((R, Hp * Wp), jnp.float32),   # border-zeroed padded flat input
            pltpu.VMEM((R, Ld), jnp.float32),        # dense depthwise / normalized rows
        ],
        compiler_params=pltpu.CompilerParams(vmem_limit_bytes=vmem_limit),
        cost_estimate=pl.CostEstimate(flops=flops, transcendentals=C,
                                      bytes_accessed=bytes_accessed),
    )(x2, dww, gamma_col, beta_col, pww2, pwb2)

    return out2.reshape(N, O, Hout, Wout)               # free row-major reshape -> NCHW


def _reference(x_nchw, dw_w_pt, dw_b, gamma, beta, pw_w_pt, pw_b, *,
               stride, padding, dilation, eps):
    """Pure-JAX reference mirroring PyTorch SepConv2d.forward (training-mode BN)."""
    C = x_nchw.shape[1]
    dw = lax.conv_general_dilated(
        x_nchw, dw_w_pt, window_strides=(stride, stride),
        padding=[(padding, padding), (padding, padding)],
        rhs_dilation=(dilation, dilation),
        dimension_numbers=('NCHW', 'OIHW', 'NCHW'),
        feature_group_count=C) + dw_b[None, :, None, None]
    mean = jnp.mean(dw, axis=(0, 2, 3), keepdims=True)
    var = jnp.mean((dw - mean) ** 2, axis=(0, 2, 3), keepdims=True)
    normed = (dw - mean) * lax.rsqrt(var + eps) * gamma[None, :, None, None] \
             + beta[None, :, None, None]
    pw = lax.conv_general_dilated(
        normed, pw_w_pt, window_strides=(1, 1), padding='VALID',
        dimension_numbers=('NCHW', 'OIHW', 'NCHW')) + pw_b[None, :, None, None]
    return pw


if __name__ == "__main__":
    # Module config
    in_channels, out_channels = 4, 8
    kernel_size, stride, padding, dilation = 3, 1, 1, 1
    N, H, W = 2, 16, 16

    key = jax.random.PRNGKey(0)
    kx, k1, k2, k3, k4, k5, k6 = jax.random.split(key, 7)

    x = jax.random.normal(kx, (N, in_channels, H, W), jnp.float32)

    # Deterministic parameter init (PyTorch shapes)
    dw_w_pt = jax.random.normal(k1, (in_channels, 1, kernel_size, kernel_size),
                                jnp.float32) * 0.2      # depthwise Conv2d weight (C,1,K,K)
    dw_b = jax.random.normal(k2, (in_channels,), jnp.float32) * 0.1
    gamma = 1.0 + 0.1 * jax.random.normal(k3, (in_channels,), jnp.float32)
    beta = 0.1 * jax.random.normal(k4, (in_channels,), jnp.float32)
    pw_w_pt = jax.random.normal(k5, (out_channels, in_channels, 1, 1),
                                jnp.float32) * 0.2      # pointwise Conv2d weight (O,C,1,1)
    pw_b = jax.random.normal(k6, (out_channels,), jnp.float32) * 0.1

    out = sep_conv2d(x, dw_w_pt, dw_b, gamma, beta, pw_w_pt, pw_b,
                     stride=stride, padding=padding, dilation=dilation)
    out = jax.block_until_ready(out)

    ref = _reference(x, dw_w_pt, dw_b, gamma, beta, pw_w_pt, pw_b,
                     stride=stride, padding=padding, dilation=dilation, eps=1e-5)
    ref = jax.block_until_ready(ref)

    np.testing.assert_allclose(np.asarray(out), np.asarray(ref),
                               rtol=1e-4, atol=1e-4)
    print("KERNEL_OK")
</pallas_src>

<mosaic_0001>
module attributes {stable_mosaic.version = 11 : i64} {
  func.func @_sepconv2d_kernel(%arg0: memref<8x256xf32, #tpu.memory_space<vmem>>, %arg1: memref<8x9xf32, #tpu.memory_space<vmem>>, %arg2: memref<4x1xf32, #tpu.memory_space<vmem>>, %arg3: memref<4x1xf32, #tpu.memory_space<vmem>>, %arg4: memref<8x4xf32, #tpu.memory_space<vmem>>, %arg5: memref<8x1xf32, #tpu.memory_space<vmem>>, %arg6: memref<16x256xf32, #tpu.memory_space<vmem>>, %arg7: memref<8x324xf32, #tpu.memory_space<vmem>>, %arg8: memref<8x256xf32, #tpu.memory_space<vmem>>) attributes {dimension_semantics = [], scalar_prefetch = 0 : i64, scratch_operands = 2 : i64, tpu.core_type = #tpu.core_type<tc>} {
    %cst = arith.constant 0.000000e+00 : f32
    %0 = vector.broadcast %cst : f32 to vector<8x19xf32>
    %c0 = arith.constant 0 : index
    %c0_0 = arith.constant 0 : index
    %1 = vector.load %arg7[%c0, %c0_0] : memref<8x324xf32, #tpu.memory_space<vmem>>, vector<8x19xf32>
    tpu.vector_store %arg7[%c0, %c0_0], %0 {strides = array<i32>} : memref<8x324xf32, #tpu.memory_space<vmem>>, vector<8x19xf32>,
    %c0_1 = arith.constant 0 : index
    %c0_2 = arith.constant 0 : index
    %2 = vector.load %arg0[%c0_1, %c0_2] : memref<8x256xf32, #tpu.memory_space<vmem>>, vector<8x16xf32>
    %c0_3 = arith.constant 0 : index
    %c19 = arith.constant 19 : index
    %3 = vector.load %arg7[%c0_3, %c19] : memref<8x324xf32, #tpu.memory_space<vmem>>, vector<8x16xf32>
    tpu.vector_store %arg7[%c0_3, %c19], %2 {strides = array<i32>} : memref<8x324xf32, #tpu.memory_space<vmem>>, vector<8x16xf32>,
    %cst_4 = arith.constant 0.000000e+00 : f32
    %4 = vector.broadcast %cst_4 : f32 to vector<8x2xf32>
    %c0_5 = arith.constant 0 : index
    %c35 = arith.constant 35 : index
    %5 = vector.load %arg7[%c0_5, %c35] : memref<8x324xf32, #tpu.memory_space<vmem>>, vector<8x2xf32>
    tpu.vector_store %arg7[%c0_5, %c35], %4 {strides = array<i32>} : memref<8x324xf32, #tpu.memory_space<vmem>>, vector<8x2xf32>,
    %c0_6 = arith.constant 0 : index
    %c16 = arith.constant 16 : index
    %6 = vector.load %arg0[%c0_6, %c16] : memref<8x256xf32, #tpu.memory_space<vmem>>, vector<8x16xf32>
    %c0_7 = arith.constant 0 : index
    %c37 = arith.constant 37 : index
    %7 = vector.load %arg7[%c0_7, %c37] : memref<8x324xf32, #tpu.memory_space<vmem>>, vector<8x16xf32>
    tpu.vector_store %arg7[%c0_7, %c37], %6 {strides = array<i32>} : memref<8x324xf32, #tpu.memory_space<vmem>>, vector<8x16xf32>,
    %cst_8 = arith.constant 0.000000e+00 : f32
    %8 = vector.broadcast %cst_8 : f32 to vector<8x2xf32>
    %c0_9 = arith.constant 0 : index
    %c53 = arith.constant 53 : index
    %9 = vector.load %arg7[%c0_9, %c53] : memref<8x324xf32, #tpu.memory_space<vmem>>, vector<8x2xf32>
    tpu.vector_store %arg7[%c0_9, %c53], %8 {strides = array<i32>} : memref<8x324xf32, #tpu.memory_space<vmem>>, vector<8x2xf32>,
    %c0_10 = arith.constant 0 : index
    %c32 = arith.constant 32 : index
    %10 = vector.load %arg0[%c0_10, %c32] : memref<8x256xf32, #tpu.memory_space<vmem>>, vector<8x16xf32>
    %c0_11 = arith.constant 0 : index
    %c55 = arith.constant 55 : index
    %11 = vector.load %arg7[%c0_11, %c55] : memref<8x324xf32, #tpu.memory_space<vmem>>, vector<8x16xf32>
    tpu.vector_store %arg7[%c0_11, %c55], %10 {strides = array<i32>} : memref<8x324xf32, #tpu.memory_space<vmem>>, vector<8x16xf32>,
    %cst_12 = arith.constant 0.000000e+00 : f32
    %12 = vector.broadcast %cst_12 : f32 to vector<8x2xf32>
    %c0_13 = arith.constant 0 : index
    %c71 = arith.constant 71 : index
    %13 = vector.load %arg7[%c0_13, %c71] : memref<8x324xf32, #tpu.memory_space<vmem>>, vector<8x2xf32>
    tpu.vector_store %arg7[%c0_13, %c71], %12 {strides = array<i32>} : memref<8x324xf32, #tpu.memory_space<vmem>>, vector<8x2xf32>,
    %c0_14 = arith.constant 0 : index
    %c48 = arith.constant 48 : index
    %14 = vector.load %arg0[%c0_14, %c48] : memref<8x256xf32, #tpu.memory_space<vmem>>, vector<8x16xf32>
    %c0_15 = arith.constant 0 : index
    %c73 = arith.constant 73 : index
    %15 = vector.load %arg7[%c0_15, %c73] : memref<8x324xf32, #tpu.memory_space<vmem>>, vector<8x16xf32>
    tpu.vector_store %arg7[%c0_15, %c73], %14 {strides = array<i32>} : memref<8x324xf32, #tpu.memory_space<vmem>>, vector<8x16xf32>,
    %cst_16 = arith.constant 0.000000e+00 : f32
    %16 = vector.broadcast %cst_16 : f32 to vector<8x2xf32>
    %c0_17 = arith.constant 0 : index
    %c89 = arith.constant 89 : index
    %17 = vector.load %arg7[%c0_17, %c89] : memref<8x324xf32, #tpu.memory_space<vmem>>, vector<8x2xf32>
    tpu.vector_store %arg7[%c0_17, %c89], %16 {strides = array<i32>} : memref<8x324xf32, #tpu.memory_space<vmem>>, vector<8x2xf32>,
    %c0_18 = arith.constant 0 : index
    %c64 = arith.constant 64 : index
    %18 = vector.load %arg0[%c0_18, %c64] : memref<8x256xf32, #tpu.memory_space<vmem>>, vector<8x16xf32>
    %c0_19 = arith.constant 0 : index
    %c91 = arith.constant 91 : index
    %19 = vector.load %arg7[%c0_19, %c91] : memref<8x324xf32, #tpu.memory_space<vmem>>, vector<8x16xf32>
    tpu.vector_store %arg7[%c0_19, %c91], %18 {strides = array<i32>} : memref<8x324xf32, #tpu.memory_space<vmem>>, vector<8x16xf32>,
    %cst_20 = arith.constant 0.000000e+00 : f32
    %20 = vector.broadcast %cst_20 : f32 to vector<8x2xf32>
    %c0_21 = arith.constant 0 : index
    %c107 = arith.constant 107 : index
    %21 = vector.load %arg7[%c0_21, %c107] : memref<8x324xf32, #tpu.memory_space<vmem>>, vector<8x2xf32>
    tpu.vector_store %arg7[%c0_21, %c107], %20 {strides = array<i32>} : memref<8x324xf32, #tpu.memory_space<vmem>>, vector<8x2xf32>,
    %c0_22 = arith.constant 0 : index
    %c80 = arith.constant 80 : index
    %22 = vector.load %arg0[%c0_22, %c80] : memref<8x256xf32, #tpu.memory_space<vmem>>, vector<8x16xf32>
    %c0_23 = arith.constant 0 : index
    %c109 = arith.constant 109 : index
    %23 = vector.load %arg7[%c0_23, %c109] : memref<8x324xf32, #tpu.memory_space<vmem>>, vector<8x16xf32>
    tpu.vector_store %arg7[%c0_23, %c109], %22 {strides = array<i32>} : memref<8x324xf32, #tpu.memory_space<vmem>>, vector<8x16xf32>,
    %cst_24 = arith.constant 0.000000e+00 : f32
    %24 = vector.broadcast %cst_24 : f32 to vector<8x2xf32>
    %c0_25 = arith.constant 0 : index
    %c125 = arith.constant 125 : index
    %25 = vector.load %arg7[%c0_25, %c125] : memref<8x324xf32, #tpu.memory_space<vmem>>, vector<8x2xf32>
    tpu.vector_store %arg7[%c0_25, %c125], %24 {strides = array<i32>} : memref<8x324xf32, #tpu.memory_space<vmem>>, vector<8x2xf32>,
    %c0_26 = arith.constant 0 : index
    %c96 = arith.constant 96 : index
    %26 = vector.load %arg0[%c0_26, %c96] : memref<8x256xf32, #tpu.memory_space<vmem>>, vector<8x16xf32>
    %c0_27 = arith.constant 0 : index
    %c127 = arith.constant 127 : index
    %27 = vector.load %arg7[%c0_27, %c127] : memref<8x324xf32, #tpu.memory_space<vmem>>, vector<8x16xf32>
    tpu.vector_store %arg7[%c0_27, %c127], %26 {strides = array<i32>} : memref<8x324xf32, #tpu.memory_space<vmem>>, vector<8x16xf32>,
    %cst_28 = arith.constant 0.000000e+00 : f32
    %28 = vector.broadcast %cst_28 : f32 to vector<8x2xf32>
    %c0_29 = arith.constant 0 : index
    %c143 = arith.constant 143 : index
    %29 = vector.load %arg7[%c0_29, %c143] : memref<8x324xf32, #tpu.memory_space<vmem>>, vector<8x2xf32>
    tpu.vector_store %arg7[%c0_29, %c143], %28 {strides = array<i32>} : memref<8x324xf32, #tpu.memory_space<vmem>>, vector<8x2xf32>,
    %c0_30 = arith.constant 0 : index
    %c112 = arith.constant 112 : index
    %30 = vector.load %arg0[%c0_30, %c112] : memref<8x256xf32, #tpu.memory_space<vmem>>, vector<8x16xf32>
    %c0_31 = arith.constant 0 : index
    %c145 = arith.constant 145 : index
    %31 = vector.load %arg7[%c0_31, %c145] : memref<8x324xf32, #tpu.memory_space<vmem>>, vector<8x16xf32>
    tpu.vector_store %arg7[%c0_31, %c145], %30 {strides = array<i32>} : memref<8x324xf32, #tpu.memory_space<vmem>>, vector<8x16xf32>,
    %cst_32 = arith.constant 0.000000e+00 : f32
    %32 = vector.broadcast %cst_32 : f32 to vector<8x2xf32>
    %c0_33 = arith.constant 0 : index
    %c161 = arith.constant 161 : index
    %33 = vector.load %arg7[%c0_33, %c161] : memref<8x324xf32, #tpu.memory_space<vmem>>, vector<8x2xf32>
    tpu.vector_store %arg7[%c0_33, %c161], %32 {strides = array<i32>} : memref<8x324xf32, #tpu.memory_space<vmem>>, vector<8x2xf32>,
    %c0_34 = arith.constant 0 : index
    %c128 = arith.constant 128 : index
    %34 = vector.load %arg0[%c0_34, %c128] : memref<8x256xf32, #tpu.memory_space<vmem>>, vector<8x16xf32>
    %c0_35 = arith.constant 0 : index
    %c163 = arith.constant 163 : index
    %35 = vector.load %arg7[%c0_35, %c163] : memref<8x324xf32, #tpu.memory_space<vmem>>, vector<8x16xf32>
    tpu.vector_store %arg7[%c0_35, %c163], %34 {strides = array<i32>} : memref<8x324xf32, #tpu.memory_space<vmem>>, vector<8x16xf32>,
    %cst_36 = arith.constant 0.000000e+00 : f32
    %36 = vector.broadcast %cst_36 : f32 to vector<8x2xf32>
    %c0_37 = arith.constant 0 : index
    %c179 = arith.constant 179 : index
    %37 = vector.load %arg7[%c0_37, %c179] : memref<8x324xf32, #tpu.memory_space<vmem>>, vector<8x2xf32>
    tpu.vector_store %arg7[%c0_37, %c179], %36 {strides = array<i32>} : memref<8x324xf32, #tpu.memory_space<vmem>>, vector<8x2xf32>,
    %c0_38 = arith.constant 0 : index
    %c144 = arith.constant 144 : index
    %38 = vector.load %arg0[%c0_38, %c144] : memref<8x256xf32, #tpu.memory_space<vmem>>, vector<8x16xf32>
    %c0_39 = arith.constant 0 : index
    %c181 = arith.constant 181 : index
    %39 = vector.load %arg7[%c0_39, %c181] : memref<8x324xf32, #tpu.memory_space<vmem>>, vector<8x16xf32>
    tpu.vector_store %arg7[%c0_39, %c181], %38 {strides = array<i32>} : memref<8x324xf32, #tpu.memory_space<vmem>>, vector<8x16xf32>,
    %cst_40 = arith.constant 0.000000e+00 : f32
    %40 = vector.broadcast %cst_40 : f32 to vector<8x2xf32>
    %c0_41 = arith.constant 0 : index
    %c197 = arith.constant 197 : index
    %41 = vector.load %arg7[%c0_41, %c197] : memref<8x324xf32, #tpu.memory_space<vmem>>, vector<8x2xf32>
    tpu.vector_store %arg7[%c0_41, %c197], %40 {strides = array<i32>} : memref<8x324xf32, #tpu.memory_space<vmem>>, vector<8x2xf32>,
    %c0_42 = arith.constant 0 : index
    %c160 = arith.constant 160 : index
    %42 = vector.load %arg0[%c0_42, %c160] : memref<8x256xf32, #tpu.memory_space<vmem>>, vector<8x16xf32>
    %c0_43 = arith.constant 0 : index
    %c199 = arith.constant 199 : index
    %43 = vector.load %arg7[%c0_43, %c199] : memref<8x324xf32, #tpu.memory_space<vmem>>, vector<8x16xf32>
    tpu.vector_store %arg7[%c0_43, %c199], %42 {strides = array<i32>} : memref<8x324xf32, #tpu.memory_space<vmem>>, vector<8x16xf32>,
    %cst_44 = arith.constant 0.000000e+00 : f32
    %44 = vector.broadcast %cst_44 : f32 to vector<8x2xf32>
    %c0_45 = arith.constant 0 : index
    %c215 = arith.constant 215 : index
    %45 = vector.load %arg7[%c0_45, %c215] : memref<8x324xf32, #tpu.memory_space<vmem>>, vector<8x2xf32>
    tpu.vector_store %arg7[%c0_45, %c215], %44 {strides = array<i32>} : memref<8x324xf32, #tpu.memory_space<vmem>>, vector<8x2xf32>,
    %c0_46 = arith.constant 0 : index
    %c176 = arith.constant 176 : index
    %46 = vector.load %arg0[%c0_46, %c176] : memref<8x256xf32, #tpu.memory_space<vmem>>, vector<8x16xf32>
    %c0_47 = arith.constant 0 : index
    %c217 = arith.constant 217 : index
    %47 = vector.load %arg7[%c0_47, %c217] : memref<8x324xf32, #tpu.memory_space<vmem>>, vector<8x16xf32>
    tpu.vector_store %arg7[%c0_47, %c217], %46 {strides = array<i32>} : memref<8x324xf32, #tpu.memory_space<vmem>>, vector<8x16xf32>,
    %cst_48 = arith.constant 0.000000e+00 : f32
    %48 = vector.broadcast %cst_48 : f32 to vector<8x2xf32>
    %c0_49 = arith.constant 0 : index
    %c233 = arith.constant 233 : index
    %49 = vector.load %arg7[%c0_49, %c233] : memref<8x324xf32, #tpu.memory_space<vmem>>, vector<8x2xf32>
    tpu.vector_store %arg7[%c0_49, %c233], %48 {strides = array<i32>} : memref<8x324xf32, #tpu.memory_space<vmem>>, vector<8x2xf32>,
    %c0_50 = arith.constant 0 : index
    %c192 = arith.constant 192 : index
    %50 = vector.load %arg0[%c0_50, %c192] : memref<8x256xf32, #tpu.memory_space<vmem>>, vector<8x16xf32>
    %c0_51 = arith.constant 0 : index
    %c235 = arith.constant 235 : index
    %51 = vector.load %arg7[%c0_51, %c235] : memref<8x324xf32, #tpu.memory_space<vmem>>, vector<8x16xf32>
    tpu.vector_store %arg7[%c0_51, %c235], %50 {strides = array<i32>} : memref<8x324xf32, #tpu.memory_space<vmem>>, vector<8x16xf32>,
    %cst_52 = arith.constant 0.000000e+00 : f32
    %52 = vector.broadcast %cst_52 : f32 to vector<8x2xf32>
    %c0_53 = arith.constant 0 : index
    %c251 = arith.constant 251 : index
    %53 = vector.load %arg7[%c0_53, %c251] : memref<8x324xf32, #tpu.memory_space<vmem>>, vector<8x2xf32>
    tpu.vector_store %arg7[%c0_53, %c251], %52 {strides = array<i32>} : memref<8x324xf32, #tpu.memory_space<vmem>>, vector<8x2xf32>,
    %c0_54 = arith.constant 0 : index
    %c208 = arith.constant 208 : index
    %54 = vector.load %arg0[%c0_54, %c208] : memref<8x256xf32, #tpu.memory_space<vmem>>, vector<8x16xf32>
    %c0_55 = arith.constant 0 : index
    %c253 = arith.constant 253 : index
    %55 = vector.load %arg7[%c0_55, %c253] : memref<8x324xf32, #tpu.memory_space<vmem>>, vector<8x16xf32>
    tpu.vector_store %arg7[%c0_55, %c253], %54 {strides = array<i32>} : memref<8x324xf32, #tpu.memory_space<vmem>>, vector<8x16xf32>,
    %cst_56 = arith.constant 0.000000e+00 : f32
    %56 = vector.broadcast %cst_56 : f32 to vector<8x2xf32>
    %c0_57 = arith.constant 0 : index
    %c269 = arith.constant 269 : index
    %57 = vector.load %arg7[%c0_57, %c269] : memref<8x324xf32, #tpu.memory_space<vmem>>, vector<8x2xf32>
    tpu.vector_store %arg7[%c0_57, %c269], %56 {strides = array<i32>} : memref<8x324xf32, #tpu.memory_space<vmem>>, vector<8x2xf32>,
    %c0_58 = arith.constant 0 : index
    %c224 = arith.constant 224 : index
    %58 = vector.load %arg0[%c0_58, %c224] : memref<8x256xf32, #tpu.memory_space<vmem>>, vector<8x16xf32>
    %c0_59 = arith.constant 0 : index
    %c271 = arith.constant 271 : index
    %59 = vector.load %arg7[%c0_59, %c271] : memref<8x324xf32, #tpu.memory_space<vmem>>, vector<8x16xf32>
    tpu.vector_store %arg7[%c0_59, %c271], %58 {strides = array<i32>} : memref<8x324xf32, #tpu.memory_space<vmem>>, vector<8x16xf32>,
    %cst_60 = arith.constant 0.000000e+00 : f32
    %60 = vector.broadcast %cst_60 : f32 to vector<8x2xf32>
    %c0_61 = arith.constant 0 : index
    %c287 = arith.constant 287 : index
    %61 = vector.load %arg7[%c0_61, %c287] : memref<8x324xf32, #tpu.memory_space<vmem>>, vector<8x2xf32>
    tpu.vector_store %arg7[%c0_61, %c287], %60 {strides = array<i32>} : memref<8x324xf32, #tpu.memory_space<vmem>>, vector<8x2xf32>,
    %c0_62 = arith.constant 0 : index
    %c240 = arith.constant 240 : index
    %62 = vector.load %arg0[%c0_62, %c240] : memref<8x256xf32, #tpu.memory_space<vmem>>, vector<8x16xf32>
    %c0_63 = arith.constant 0 : index
    %c289 = arith.constant 289 : index
    %63 = vector.load %arg7[%c0_63, %c289] : memref<8x324xf32, #tpu.memory_space<vmem>>, vector<8x16xf32>
    tpu.vector_store %arg7[%c0_63, %c289], %62 {strides = array<i32>} : memref<8x324xf32, #tpu.memory_space<vmem>>, vector<8x16xf32>,
    %cst_64 = arith.constant 0.000000e+00 : f32
    %64 = vector.broadcast %cst_64 : f32 to vector<8x19xf32>
    %c0_65 = arith.constant 0 : index
    %c305 = arith.constant 305 : index
    %65 = vector.load %arg7[%c0_65, %c305] : memref<8x324xf32, #tpu.memory_space<vmem>>, vector<8x19xf32>
    tpu.vector_store %arg7[%c0_65, %c305], %64 {strides = array<i32>} : memref<8x324xf32, #tpu.memory_space<vmem>>, vector<8x19xf32>,
    %c0_66 = arith.constant 0 : index
    %c0_67 = arith.constant 0 : index
    %66 = vector.load %arg7[%c0_66, %c0_67] : memref<8x324xf32, #tpu.memory_space<vmem>>, vector<8x324xf32>
    %c0_68 = arith.constant 0 : index
    %c0_69 = arith.constant 0 : index
    %67 = vector.load %arg1[%c0_68, %c0_69] : memref<8x9xf32, #tpu.memory_space<vmem>>, vector<8x9xf32>
    %68 = vector.extract_strided_slice %66 {offsets = [0, 0], sizes = [8, 286], strides = [1, 1]} : vector<8x324xf32> to vector<8x286xf32>
    %69 = vector.extract_strided_slice %67 {offsets = [0, 0], sizes = [8, 1], strides = [1, 1]} : vector<8x9xf32> to vector<8x1xf32>
    %70 = vector.broadcast %69 : vector<8x1xf32> to vector<8x286xf32>
    %71 = arith.mulf %68, %70 : vector<8x286xf32>
    %72 = vector.extract_strided_slice %66 {offsets = [0, 1], sizes = [8, 286], strides = [1, 1]} : vector<8x324xf32> to vector<8x286xf32>
    %73 = vector.extract_strided_slice %67 {offsets = [0, 1], sizes = [8, 1], strides = [1, 1]} : vector<8x9xf32> to vector<8x1xf32>
    %74 = vector.broadcast %73 : vector<8x1xf32> to vector<8x286xf32>
    %75 = arith.mulf %72, %74 : vector<8x286xf32>
    %76 = arith.addf %71, %75 : vector<8x286xf32>
    %77 = vector.extract_strided_slice %66 {offsets = [0, 2], sizes = [8, 286], strides = [1, 1]} : vector<8x324xf32> to vector<8x286xf32>
    %78 = vector.extract_strided_slice %67 {offsets = [0, 2], sizes = [8, 1], strides = [1, 1]} : vector<8x9xf32> to vector<8x1xf32>
    %79 = vector.broadcast %78 : vector<8x1xf32> to vector<8x286xf32>
    %80 = arith.mulf %77, %79 : vector<8x286xf32>
    %81 = arith.addf %76, %80 : vector<8x286xf32>
    %82 = vector.extract_strided_slice %66 {offsets = [0, 18], sizes = [8, 286], strides = [1, 1]} : vector<8x324xf32> to vector<8x286xf32>
    %83 = vector.extract_strided_slice %67 {offsets = [0, 3], sizes = [8, 1], strides = [1, 1]} : vector<8x9xf32> to vector<8x1xf32>
    %84 = vector.broadcast %83 : vector<8x1xf32> to vector<8x286xf32>
    %85 = arith.mulf %82, %84 : vector<8x286xf32>
    %86 = arith.addf %81, %85 : vector<8x286xf32>
    %87 = vector.extract_strided_slice %66 {offsets = [0, 19], sizes = [8, 286], strides = [1, 1]} : vector<8x324xf32> to vector<8x286xf32>
    %88 = vector.extract_strided_slice %67 {offsets = [0, 4], sizes = [8, 1], strides = [1, 1]} : vector<8x9xf32> to vector<8x1xf32>
    %89 = vector.broadcast %88 : vector<8x1xf32> to vector<8x286xf32>
    %90 = arith.mulf %87, %89 : vector<8x286xf32>
    %91 = arith.addf %86, %90 : vector<8x286xf32>
    %92 = vector.extract_strided_slice %66 {offsets = [0, 20], sizes = [8, 286], strides = [1, 1]} : vector<8x324xf32> to vector<8x286xf32>
    %93 = vector.extract_strided_slice %67 {offsets = [0, 5], sizes = [8, 1], strides = [1, 1]} : vector<8x9xf32> to vector<8x1xf32>
    %94 = vector.broadcast %93 : vector<8x1xf32> to vector<8x286xf32>
    %95 = arith.mulf %92, %94 : vector<8x286xf32>
    %96 = arith.addf %91, %95 : vector<8x286xf32>
    %97 = vector.extract_strided_slice %66 {offsets = [0, 36], sizes = [8, 286], strides = [1, 1]} : vector<8x324xf32> to vector<8x286xf32>
    %98 = vector.extract_strided_slice %67 {offsets = [0, 6], sizes = [8, 1], strides = [1, 1]} : vector<8x9xf32> to vector<8x1xf32>
    %99 = vector.broadcast %98 : vector<8x1xf32> to vector<8x286xf32>
    %100 = arith.mulf %97, %99 : vector<8x286xf32>
    %101 = arith.addf %96, %100 : vector<8x286xf32>
    %102 = vector.extract_strided_slice %66 {offsets = [0, 37], sizes = [8, 286], strides = [1, 1]} : vector<8x324xf32> to vector<8x286xf32>
    %103 = vector.extract_strided_slice %67 {offsets = [0, 7], sizes = [8, 1], strides = [1, 1]} : vector<8x9xf32> to vector<8x1xf32>
    %104 = vector.broadcast %103 : vector<8x1xf32> to vector<8x286xf32>
    %105 = arith.mulf %102, %104 : vector<8x286xf32>
    %106 = arith.addf %101, %105 : vector<8x286xf32>
    %107 = vector.extract_strided_slice %66 {offsets = [0, 38], sizes = [8, 286], strides = [1, 1]} : vector<8x324xf32> to vector<8x286xf32>
    %108 = vector.extract_strided_slice %67 {offsets = [0, 8], sizes = [8, 1], strides = [1, 1]} : vector<8x9xf32> to vector<8x1xf32>
    %109 = vector.broadcast %108 : vector<8x1xf32> to vector<8x286xf32>
    %110 = arith.mulf %107, %109 : vector<8x286xf32>
    %111 = arith.addf %106, %110 : vector<8x286xf32>
    %112 = vector.extract_strided_slice %111 {offsets = [0, 0], sizes = [8, 16], strides = [1, 1]} : vector<8x286xf32> to vector<8x16xf32>
    %c0_70 = arith.constant 0 : index
    %c0_71 = arith.constant 0 : index
    %113 = vector.load %arg8[%c0_70, %c0_71] : memref<8x256xf32, #tpu.memory_space<vmem>>, vector<8x16xf32>
    tpu.vector_store %arg8[%c0_70, %c0_71], %112 {strides = array<i32>} : memref<8x256xf32, #tpu.memory_space<vmem>>, vector<8x16xf32>,
    %114 = vector.extract_strided_slice %111 {offsets = [0, 18], sizes = [8, 16], strides = [1, 1]} : vector<8x286xf32> to vector<8x16xf32>
    %c0_72 = arith.constant 0 : index
    %c16_73 = arith.constant 16 : index
    %115 = vector.load %arg8[%c0_72, %c16_73] : memref<8x256xf32, #tpu.memory_space<vmem>>, vector<8x16xf32>
    tpu.vector_store %arg8[%c0_72, %c16_73], %114 {strides = array<i32>} : memref<8x256xf32, #tpu.memory_space<vmem>>, vector<8x16xf32>,
    %116 = vector.extract_strided_slice %111 {offsets = [0, 36], sizes = [8, 16], strides = [1, 1]} : vector<8x286xf32> to vector<8x16xf32>
    %c0_74 = arith.constant 0 : index
    %c32_75 = arith.constant 32 : index
    %117 = vector.load %arg8[%c0_74, %c32_75] : memref<8x256xf32, #tpu.memory_space<vmem>>, vector<8x16xf32>
    tpu.vector_store %arg8[%c0_74, %c32_75], %116 {strides = array<i32>} : memref<8x256xf32, #tpu.memory_space<vmem>>, vector<8x16xf32>,
    %118 = vector.extract_strided_slice %111 {offsets = [0, 54], sizes = [8, 16], strides = [1, 1]} : vector<8x286xf32> to vector<8x16xf32>
    %c0_76 = arith.constant 0 : index
    %c48_77 = arith.constant 48 : index
    %119 = vector.load %arg8[%c0_76, %c48_77] : memref<8x256xf32, #tpu.memory_space<vmem>>, vector<8x16xf32>
    tpu.vector_store %arg8[%c0_76, %c48_77], %118 {strides = array<i32>} : memref<8x256xf32, #tpu.memory_space<vmem>>, vector<8x16xf32>,
    %120 = vector.extract_strided_slice %111 {offsets = [0, 72], sizes = [8, 16], strides = [1, 1]} : vector<8x286xf32> to vector<8x16xf32>
    %c0_78 = arith.constant 0 : index
    %c64_79 = arith.constant 64 : index
    %121 = vector.load %arg8[%c0_78, %c64_79] : memref<8x256xf32, #tpu.memory_space<vmem>>, vector<8x16xf32>
    tpu.vector_store %arg8[%c0_78, %c64_79], %120 {strides = array<i32>} : memref<8x256xf32, #tpu.memory_space<vmem>>, vector<8x16xf32>,
    %122 = vector.extract_strided_slice %111 {offsets = [0, 90], sizes = [8, 16], strides = [1, 1]} : vector<8x286xf32> to vector<8x16xf32>
    %c0_80 = arith.constant 0 : index
    %c80_81 = arith.constant 80 : index
    %123 = vector.load %arg8[%c0_80, %c80_81] : memref<8x256xf32, #tpu.memory_space<vmem>>, vector<8x16xf32>
    tpu.vector_store %arg8[%c0_80, %c80_81], %122 {strides = array<i32>} : memref<8x256xf32, #tpu.memory_space<vmem>>, vector<8x16xf32>,
    %124 = vector.extract_strided_slice %111 {offsets = [0, 108], sizes = [8, 16], strides = [1, 1]} : vector<8x286xf32> to vector<8x16xf32>
    %c0_82 = arith.constant 0 : index
    %c96_83 = arith.constant 96 : index
    %125 = vector.load %arg8[%c0_82, %c96_83] : memref<8x256xf32, #tpu.memory_space<vmem>>, vector<8x16xf32>
    tpu.vector_store %arg8[%c0_82, %c96_83], %124 {strides = array<i32>} : memref<8x256xf32, #tpu.memory_space<vmem>>, vector<8x16xf32>,
    %126 = vector.extract_strided_slice %111 {offsets = [0, 126], sizes = [8, 16], strides = [1, 1]} : vector<8x286xf32> to vector<8x16xf32>
    %c0_84 = arith.constant 0 : index
    %c112_85 = arith.constant 112 : index
    %127 = vector.load %arg8[%c0_84, %c112_85] : memref<8x256xf32, #tpu.memory_space<vmem>>, vector<8x16xf32>
    tpu.vector_store %arg8[%c0_84, %c112_85], %126 {strides = array<i32>} : memref<8x256xf32, #tpu.memory_space<vmem>>, vector<8x16xf32>,
    %128 = vector.extract_strided_slice %111 {offsets = [0, 144], sizes = [8, 16], strides = [1, 1]} : vector<8x286xf32> to vector<8x16xf32>
    %c0_86 = arith.constant 0 : index
    %c128_87 = arith.constant 128 : index
    %129 = vector.load %arg8[%c0_86, %c128_87] : memref<8x256xf32, #tpu.memory_space<vmem>>, vector<8x16xf32>
    tpu.vector_store %arg8[%c0_86, %c128_87], %128 {strides = array<i32>} : memref<8x256xf32, #tpu.memory_space<vmem>>, vector<8x16xf32>,
    %130 = vector.extract_strided_slice %111 {offsets = [0, 162], sizes = [8, 16], strides = [1, 1]} : vector<8x286xf32> to vector<8x16xf32>
    %c0_88 = arith.constant 0 : index
    %c144_89 = arith.constant 144 : index
    %131 = vector.load %arg8[%c0_88, %c144_89] : memref<8x256xf32, #tpu.memory_space<vmem>>, vector<8x16xf32>
    tpu.vector_store %arg8[%c0_88, %c144_89], %130 {strides = array<i32>} : memref<8x256xf32, #tpu.memory_space<vmem>>, vector<8x16xf32>,
    %132 = vector.extract_strided_slice %111 {offsets = [0, 180], sizes = [8, 16], strides = [1, 1]} : vector<8x286xf32> to vector<8x16xf32>
    %c0_90 = arith.constant 0 : index
    %c160_91 = arith.constant 160 : index
    %133 = vector.load %arg8[%c0_90, %c160_91] : memref<8x256xf32, #tpu.memory_space<vmem>>, vector<8x16xf32>
    tpu.vector_store %arg8[%c0_90, %c160_91], %132 {strides = array<i32>} : memref<8x256xf32, #tpu.memory_space<vmem>>, vector<8x16xf32>,
    %134 = vector.extract_strided_slice %111 {offsets = [0, 198], sizes = [8, 16], strides = [1, 1]} : vector<8x286xf32> to vector<8x16xf32>
    %c0_92 = arith.constant 0 : index
    %c176_93 = arith.constant 176 : index
    %135 = vector.load %arg8[%c0_92, %c176_93] : memref<8x256xf32, #tpu.memory_space<vmem>>, vector<8x16xf32>
    tpu.vector_store %arg8[%c0_92, %c176_93], %134 {strides = array<i32>} : memref<8x256xf32, #tpu.memory_space<vmem>>, vector<8x16xf32>,
    %136 = vector.extract_strided_slice %111 {offsets = [0, 216], sizes = [8, 16], strides = [1, 1]} : vector<8x286xf32> to vector<8x16xf32>
    %c0_94 = arith.constant 0 : index
    %c192_95 = arith.constant 192 : index
    %137 = vector.load %arg8[%c0_94, %c192_95] : memref<8x256xf32, #tpu.memory_space<vmem>>, vector<8x16xf32>
    tpu.vector_store %arg8[%c0_94, %c192_95], %136 {strides = array<i32>} : memref<8x256xf32, #tpu.memory_space<vmem>>, vector<8x16xf32>,
    %138 = vector.extract_strided_slice %111 {offsets = [0, 234], sizes = [8, 16], strides = [1, 1]} : vector<8x286xf32> to vector<8x16xf32>
    %c0_96 = arith.constant 0 : index
    %c208_97 = arith.constant 208 : index
    %139 = vector.load %arg8[%c0_96, %c208_97] : memref<8x256xf32, #tpu.memory_space<vmem>>, vector<8x16xf32>
    tpu.vector_store %arg8[%c0_96, %c208_97], %138 {strides = array<i32>} : memref<8x256xf32, #tpu.memory_space<vmem>>, vector<8x16xf32>,
    %140 = vector.extract_strided_slice %111 {offsets = [0, 252], sizes = [8, 16], strides = [1, 1]} : vector<8x286xf32> to vector<8x16xf32>
    %c0_98 = arith.constant 0 : index
    %c224_99 = arith.constant 224 : index
    %141 = vector.load %arg8[%c0_98, %c224_99] : memref<8x256xf32, #tpu.memory_space<vmem>>, vector<8x16xf32>
    tpu.vector_store %arg8[%c0_98, %c224_99], %140 {strides = array<i32>} : memref<8x256xf32, #tpu.memory_space<vmem>>, vector<8x16xf32>,
    %142 = vector.extract_strided_slice %111 {offsets = [0, 270], sizes = [8, 16], strides = [1, 1]} : vector<8x286xf32> to vector<8x16xf32>
    %c0_100 = arith.constant 0 : index
    %c240_101 = arith.constant 240 : index
    %143 = vector.load %arg8[%c0_100, %c240_101] : memref<8x256xf32, #tpu.memory_space<vmem>>, vector<8x16xf32>
    tpu.vector_store %arg8[%c0_100, %c240_101], %142 {strides = array<i32>} : memref<8x256xf32, #tpu.memory_space<vmem>>, vector<8x16xf32>,
    %c0_102 = arith.constant 0 : index
    %c0_103 = arith.constant 0 : index
    %144 = vector.load %arg8[%c0_102, %c0_103] : memref<8x256xf32, #tpu.memory_space<vmem>>, vector<4x256xf32>
    %c4 = arith.constant 4 : index
    %c0_104 = arith.constant 0 : index
    %145 = vector.load %arg8[%c4, %c0_104] : memref<8x256xf32, #tpu.memory_space<vmem>>, vector<4x256xf32>
    %146 = arith.mulf %144, %144 : vector<4x256xf32>
    %147 = arith.addf %144, %145 : vector<4x256xf32>
    %148 = arith.mulf %145, %145 : vector<4x256xf32>
    %149 = arith.addf %146, %148 : vector<4x256xf32>
    %cst_105 = arith.constant dense<0.000000e+00> : vector<4xf32>
    %150 = vector.multi_reduction <add>, %147, %cst_105 [1] : vector<4x256xf32> to vector<4xf32>
    %151 = vector.shape_cast %150 : vector<4xf32> to vector<4x1xf32>
    %cst_106 = arith.constant dense<0.000000e+00> : vector<4xf32>
    %152 = vector.multi_reduction <add>, %149, %cst_106 [1] : vector<4x256xf32> to vector<4xf32>
    %153 = vector.shape_cast %152 : vector<4xf32> to vector<4x1xf32>
    %cst_107 = arith.constant 0.001953125 : f32
    %154 = vector.broadcast %cst_107 : f32 to vector<4x1xf32>
    %155 = arith.mulf %151, %154 : vector<4x1xf32>
    %cst_108 = arith.constant 0.001953125 : f32
    %156 = vector.broadcast %cst_108 : f32 to vector<4x1xf32>
    %157 = arith.mulf %153, %156 : vector<4x1xf32>
    %158 = arith.mulf %155, %155 : vector<4x1xf32>
    %159 = arith.subf %157, %158 : vector<4x1xf32>
    %cst_109 = arith.constant 0.000000e+00 : f32
    %160 = vector.broadcast %cst_109 : f32 to vector<4x1xf32>
    %161 = arith.maximumf %159, %160 : vector<4x1xf32>
    %cst_110 = arith.constant 9.99999974E-6 : f32
    %162 = vector.broadcast %cst_110 : f32 to vector<4x1xf32>
    %163 = arith.addf %161, %162 : vector<4x1xf32>
    %164 = math.rsqrt %163 : vector<4x1xf32>
    %c0_111 = arith.constant 0 : index
    %c0_112 = arith.constant 0 : index
    %165 = vector.load %arg2[%c0_111, %c0_112] : memref<4x1xf32, #tpu.memory_space<vmem>>, vector<4x1xf32>
    %166 = arith.mulf %164, %165 : vector<4x1xf32>
    %c0_113 = arith.constant 0 : index
    %c0_114 = arith.constant 0 : index
    %167 = vector.load %arg3[%c0_113, %c0_114] : memref<4x1xf32, #tpu.memory_space<vmem>>, vector<4x1xf32>
    %168 = arith.mulf %155, %166 : vector<4x1xf32>
    %169 = arith.subf %167, %168 : vector<4x1xf32>
    %170 = vector.broadcast %166 : vector<4x1xf32> to vector<4x256xf32>
    %171 = arith.mulf %144, %170 : vector<4x256xf32>
    %172 = vector.broadcast %169 : vector<4x1xf32> to vector<4x256xf32>
    %173 = arith.addf %171, %172 : vector<4x256xf32>
    %c0_115 = arith.constant 0 : index
    %c0_116 = arith.constant 0 : index
    %174 = vector.load %arg8[%c0_115, %c0_116] : memref<8x256xf32, #tpu.memory_space<vmem>>, vector<4x256xf32>
    tpu.vector_store %arg8[%c0_115, %c0_116], %173 {strides = array<i32>} : memref<8x256xf32, #tpu.memory_space<vmem>>, vector<4x256xf32>,
    %175 = vector.broadcast %166 : vector<4x1xf32> to vector<4x256xf32>
    %176 = arith.mulf %145, %175 : vector<4x256xf32>
    %177 = vector.broadcast %169 : vector<4x1xf32> to vector<4x256xf32>
    %178 = arith.addf %176, %177 : vector<4x256xf32>
    %c4_117 = arith.constant 4 : index
    %c0_118 = arith.constant 0 : index
    %179 = vector.load %arg8[%c4_117, %c0_118] : memref<8x256xf32, #tpu.memory_space<vmem>>, vector<4x256xf32>
    tpu.vector_store %arg8[%c4_117, %c0_118], %178 {strides = array<i32>} : memref<8x256xf32, #tpu.memory_space<vmem>>, vector<4x256xf32>,
    %c0_119 = arith.constant 0 : index
    %c0_120 = arith.constant 0 : index
    %180 = vector.load %arg4[%c0_119, %c0_120] : memref<8x4xf32, #tpu.memory_space<vmem>>, vector<8x4xf32>
    %c0_121 = arith.constant 0 : index
    %c0_122 = arith.constant 0 : index
    %181 = vector.load %arg5[%c0_121, %c0_122] : memref<8x1xf32, #tpu.memory_space<vmem>>, vector<8x1xf32>
    %c0_123 = arith.constant 0 : index
    %c0_124 = arith.constant 0 : index
    %182 = vector.load %arg8[%c0_123, %c0_124] : memref<8x256xf32, #tpu.memory_space<vmem>>, vector<1x256xf32>
    %183 = vector.extract_strided_slice %180 {offsets = [0, 0], sizes = [8, 1], strides = [1, 1]} : vector<8x4xf32> to vector<8x1xf32>
    %184 = vector.broadcast %182 : vector<1x256xf32> to vector<8x256xf32>
    %185 = vector.broadcast %183 : vector<8x1xf32> to vector<8x256xf32>
    %186 = arith.mulf %184, %185 : vector<8x256xf32>
    %187 = vector.broadcast %181 : vector<8x1xf32> to vector<8x256xf32>
    %188 = arith.addf %187, %186 : vector<8x256xf32>
    %c1 = arith.constant 1 : index
    %c0_125 = arith.constant 0 : index
    %189 = vector.load %arg8[%c1, %c0_125] : memref<8x256xf32, #tpu.memory_space<vmem>>, vector<1x256xf32>
    %190 = vector.extract_strided_slice %180 {offsets = [0, 1], sizes = [8, 1], strides = [1, 1]} : vector<8x4xf32> to vector<8x1xf32>
    %191 = vector.broadcast %189 : vector<1x256xf32> to vector<8x256xf32>
    %192 = vector.broadcast %190 : vector<8x1xf32> to vector<8x256xf32>
    %193 = arith.mulf %191, %192 : vector<8x256xf32>
    %194 = arith.addf %188, %193 : vector<8x256xf32>
    %c2 = arith.constant 2 : index
    %c0_126 = arith.constant 0 : index
    %195 = vector.load %arg8[%c2, %c0_126] : memref<8x256xf32, #tpu.memory_space<vmem>>, vector<1x256xf32>
    %196 = vector.extract_strided_slice %180 {offsets = [0, 2], sizes = [8, 1], strides = [1, 1]} : vector<8x4xf32> to vector<8x1xf32>
    %197 = vector.broadcast %195 : vector<1x256xf32> to vector<8x256xf32>
    %198 = vector.broadcast %196 : vector<8x1xf32> to vector<8x256xf32>
    %199 = arith.mulf %197, %198 : vector<8x256xf32>
    %200 = arith.addf %194, %199 : vector<8x256xf32>
    %c3 = arith.constant 3 : index
    %c0_127 = arith.constant 0 : index
    %201 = vector.load %arg8[%c3, %c0_127] : memref<8x256xf32, #tpu.memory_space<vmem>>, vector<1x256xf32>
    %202 = vector.extract_strided_slice %180 {offsets = [0, 3], sizes = [8, 1], strides = [1, 1]} : vector<8x4xf32> to vector<8x1xf32>
    %203 = vector.broadcast %201 : vector<1x256xf32> to vector<8x256xf32>
    %204 = vector.broadcast %202 : vector<8x1xf32> to vector<8x256xf32>
    %205 = arith.mulf %203, %204 : vector<8x256xf32>
    %206 = arith.addf %200, %205 : vector<8x256xf32>
    %c4_128 = arith.constant 4 : index
    %c0_129 = arith.constant 0 : index
    %207 = vector.load %arg8[%c4_128, %c0_129] : memref<8x256xf32, #tpu.memory_space<vmem>>, vector<1x256xf32>
    %208 = vector.extract_strided_slice %180 {offsets = [0, 0], sizes = [8, 1], strides = [1, 1]} : vector<8x4xf32> to vector<8x1xf32>
    %209 = vector.broadcast %207 : vector<1x256xf32> to vector<8x256xf32>
    %210 = vector.broadcast %208 : vector<8x1xf32> to vector<8x256xf32>
    %211 = arith.mulf %209, %210 : vector<8x256xf32>
    %212 = vector.broadcast %181 : vector<8x1xf32> to vector<8x256xf32>
    %213 = arith.addf %212, %211 : vector<8x256xf32>
    %c5 = arith.constant 5 : index
    %c0_130 = arith.constant 0 : index
    %214 = vector.load %arg8[%c5, %c0_130] : memref<8x256xf32, #tpu.memory_space<vmem>>, vector<1x256xf32>
    %215 = vector.extract_strided_slice %180 {offsets = [0, 1], sizes = [8, 1], strides = [1, 1]} : vector<8x4xf32> to vector<8x1xf32>
    %216 = vector.broadcast %214 : vector<1x256xf32> to vector<8x256xf32>
    %217 = vector.broadcast %215 : vector<8x1xf32> to vector<8x256xf32>
    %218 = arith.mulf %216, %217 : vector<8x256xf32>
    %219 = arith.addf %213, %218 : vector<8x256xf32>
    %c6 = arith.constant 6 : index
    %c0_131 = arith.constant 0 : index
    %220 = vector.load %arg8[%c6, %c0_131] : memref<8x256xf32, #tpu.memory_space<vmem>>, vector<1x256xf32>
    %221 = vector.extract_strided_slice %180 {offsets = [0, 2], sizes = [8, 1], strides = [1, 1]} : vector<8x4xf32> to vector<8x1xf32>
    %222 = vector.broadcast %220 : vector<1x256xf32> to vector<8x256xf32>
    %223 = vector.broadcast %221 : vector<8x1xf32> to vector<8x256xf32>
    %224 = arith.mulf %222, %223 : vector<8x256xf32>
    %225 = arith.addf %219, %224 : vector<8x256xf32>
    %c7 = arith.constant 7 : index
    %c0_132 = arith.constant 0 : index
    %226 = vector.load %arg8[%c7, %c0_132] : memref<8x256xf32, #tpu.memory_space<vmem>>, vector<1x256xf32>
    %227 = vector.extract_strided_slice %180 {offsets = [0, 3], sizes = [8, 1], strides = [1, 1]} : vector<8x4xf32> to vector<8x1xf32>
    %228 = vector.broadcast %226 : vector<1x256xf32> to vector<8x256xf32>
    %229 = vector.broadcast %227 : vector<8x1xf32> to vector<8x256xf32>
    %230 = arith.mulf %228, %229 : vector<8x256xf32>
    %231 = arith.addf %225, %230 : vector<8x256xf32>
    %232 = tpu.concatenate %206, %231 in 0 : vector<8x256xf32>, vector<8x256xf32> -> vector<16x256xf32>
    %c0_133 = arith.constant 0 : index
    %c0_134 = arith.constant 0 : index
    %233 = vector.load %arg6[%c0_133, %c0_134] : memref<16x256xf32, #tpu.memory_space<vmem>>, vector<16x256xf32>
    tpu.vector_store %arg6[%c0_133, %c0_134], %232 {strides = array<i32>} : memref<16x256xf32, #tpu.memory_space<vmem>>, vector<16x256xf32>,
    return
  }
}

</mosaic_0001>

<bundles_post_ra>
// kernel: tpu_custom_call.1
= control target key start
LH: loop header
LB: loop body
LE: loop exit
PB: predicated region body
PF: predicated region fallthrough
CT: control target
= control target key end

     0   :  { %s807_s23 = smov 31   ;;  %s808_s24 = smov 19   ;;  %v809_v2 = vmov 2   ;;  %v810_v3 = vmov 1   ;;  %vm24_vm0 = vcmask 154624   ;;  %v811_v4 = vmov 0.0   ;;  %s992_s0 = inlined_call_operand.vmem [shape: f32[8,256], index: 0, kind: input, shape index: {}]   ;;  %s993_s1 = inlined_call_operand.vmem [shape: f32[8,9], index: 1, kind: input, shape index: {}]   ;;  %s994_s2 = inlined_call_operand.vmem [shape: f32[4,1], index: 2, kind: input, shape index: {}]   ;;  %s995_s3 = inlined_call_operand.vmem [shape: f32[4,1], index: 3, kind: input, shape index: {}]   ;;  %s996_s4 = inlined_call_operand.vmem [shape: f32[8,4], index: 4, kind: input, shape index: {}]   ;;  %s997_s5 = inlined_call_operand.vmem [shape: f32[8,1], index: 5, kind: input, shape index: {}]   ;;  %s998_s6 = inlined_call_operand.hbm [shape: f32[16,256], index: 6, kind: output, shape index: {}]  }
   0x1   :  { %v80_v0 = vld [vmem:[%s992_s0] sm:$0xff]  ;;  %v100_v1 = vld [vmem:[%s992_s0 + $0x8] sm:$0xff]  ;;  %768 = vset.pattern.permute.xlu1 %v809_v2  ;;  %767 = vset.pattern.permute.xlu0 %v810_v3  ;;  %25 = vst.msk [vmem:[#allocation2] sm:$0xff] %vm24_vm0, %v811_v4  ;;  %s812_s27 = smov 33   ;;  %s813_s28 = smov 35  }
   0x2   :  { %82 = vrot.lane.b32.xlu0 %v80_v0, %s807_s23  ;;  %28 = vrot.lane.b32.xlu1 %v80_v0, %s808_s24 }
   0x6   :  { %93 = vrot.lane.b32.xlu0 %v80_v0, %s812_s27  ;;  %102 = vrot.lane.b32.xlu1 %v100_v1, %s813_s28 }
   0x7   :  { %11 = vsyncpa [#allocation5], 0  ;;  %s814_s29 = smov 21   ;;  %s815_s30 = smov 37   ;;  %v177_v5 = vld [vmem:[%s993_s1] sm:$0xff]  ;;  %v826_v6 = vmov 4  }
   0x8   :  { %s816_s0 = smov 23   ;;  %s817_s7 = smov 39   ;;  %v827_v7 = vmov 3   ;;  %v828_v8 = vmov 7   ;;  %v829_v9 = vmov 5   ;;  %v830_v10 = vmov 6  }
   0x9   :  { %s818_s8 = smov 25   ;;  %s819_s9 = smov 45   ;;  %v831_v11 = vmov 0   ;;  %v832_v12 = vmov 8   ;;  %vm87_vm1 = vcmask 121856   ;;  %vm31_vm2 = vcmask 285848  }
   0xa   :  { %37 = vrot.lane.b32.xlu0 %v80_v0, %s814_s29  ;;  %111 = vrot.lane.b32.xlu1 %v100_v1, %s815_s30  ;;  %s820_s10 = smov 41   ;;  %s821_s11 = smov 27   ;;  %vm89_vm3 = vcmask 138360   ;;  %vm33_vm4 = vcmask 302360   ;;  %vm96_vm5 = vcmask 269448   ;;  %vm98_vm6 = vcmask 285960  }
   0xb   :  { %s822_s12 = smov 47   ;;  %s823_s13 = smov 43   ;;  %vm105_vm7 = vcmask 417048   ;;  %vm107_vm8 = vcmask 433560   ;;  %vm40_vm9 = vcmask 433448   ;;  %vm114_vm10 = vcmask 564648  }
   0xc   :  { %s824_s14 = smov 29   ;;  %s825_s15 = smov 49   ;;  %vm42_vm11 = vcmask 449960   ;;  %vm116_vm12 = vcmask 581160   ;;  %vm49_vm13 = vcmask 581048   ;;  %vm123_vm14 = vcmask 712248  }
   0xd   :  { %vm51_vm15 = vcmask 597560   ;;  %vm125_vm0 = vcmask 728760   ;;  %s833_s1 = smov 127   ;;  %s834_s18 = smov 126  }
   0xe   :  { %46 = vrot.lane.b32.xlu0 %v80_v0, %s816_s0  ;;  %120 = vrot.lane.b32.xlu1 %v100_v1, %s817_s7  ;;  %s835_s19 = smov 109   ;;  %s836_s20 = smov 110  }
   0xf   :  { %s837_s21 = smov 108   ;;  %s838_s22 = smov 91  }
  0x10   :  { %s839_s23 = smov 92   ;;  %s840_s24 = smov 90  }
  0x11   :  { %s841_s25 = smov 100   ;;  %s842_s26 = smov 124  }
  0x12   :  { %55 = vrot.lane.b32.xlu0 %v80_v0, %s818_s8  ;;  %147 = vrot.lane.b32.xlu1 %v100_v1, %s819_s9  ;;  %s843_s27 = smov 112   ;;  %s844_s28 = smov 122  }
  0x13   :  { %s845_s29 = smov 120   ;;  %s846_s30 = smov 118  }
  0x14   :  { %s847_s0 = smov 106   ;;  %s848_s7 = smov 104  }
  0x15   :  { %s849_s8 = smov 116   ;;  %s850_s9 = smov 102  }
  0x16   :  { %129 = vrot.lane.b32.xlu0 %v100_v1, %s820_s10  ;;  %64 = vrot.lane.b32.xlu1 %v80_v0, %s821_s11  ;;  %s851_s10 = smov 114   ;;  %s852_s11 = smov 98  }
  0x1a   :  { %158 = vrot.lane.b32.xlu0 %v100_v1, %s822_s12  ;;  %138 = vrot.lane.b32.xlu1 %v100_v1, %s823_s13 }
  0x1e   :  { %73 = vrot.lane.b32.xlu0 %v80_v0, %s824_s14  ;;  %167 = vrot.lane.b32.xlu1 %v100_v1, %s825_s15 }
  0x22   :  { %187 = vperm.xlu0 %767, %v177_v5   ;;  %212 = vperm.xlu1 %768, %v177_v5  }
  0x26   :  { %770 = vset.pattern.permute.xlu0 %v826_v6  ;;  %769 = vset.pattern.permute.xlu1 %v827_v7 }
  0x27   :  { %262 = vperm.xlu0 %770, %v177_v5   ;;  %237 = vperm.xlu1 %769, %v177_v5  }
  0x2b   :  { %773 = vset.pattern.permute.xlu0 %v828_v8  ;;  %771 = vset.pattern.permute.xlu1 %v829_v9 }
  0x2c   :  { %337 = vperm.xlu0 %773, %v177_v5   ;;  %287 = vperm.xlu1 %771, %v177_v5  }
  0x30   :  { %772 = vset.pattern.permute.xlu1 %v830_v10  ;;  %776 = vset.pattern.permute.xlu0 %v831_v11 }
  0x31   :  { %312 = vperm.xlu1 %772, %v177_v5  }
  0x35   :  { %774 = vset.pattern.permute.xlu1 %v832_v12 }
  0x36   :  { %362 = vperm.xlu1 %774, %v177_v5  }
  0x3a   :  { %775 = vset.pattern.permute.xlu1 %v831_v11 }
  0x3b   :  { %180 = vperm.xlu1 %775, %v177_v5  }
  0x74   :  { %v904_v13 = vpop.permute.xlu0 %82  ;;  %v29_v14 = vpop.permute.xlu1 %28 }
  0x75   :  { %88 = vst.msk [vmem:[#allocation2 + $0x8] sm:$0xff] %vm87_vm1, %v904_v13  ;;  %vm58_vm1 = vcmask 728648  }
  0x76   :  { %32 = vst.msk [vmem:[#allocation2] sm:$0xff] %vm31_vm2, %v29_v14  ;;  %vm152_vm2 = vcmask 105472  }
  0x77   :  { %90 = vst.msk [vmem:[#allocation2 + $0x8] sm:$0xff] %vm89_vm3, %v811_v4  ;;  %vm60_vm3 = vcmask 745160  }
  0x78   :  { %34 = vst.msk [vmem:[#allocation2] sm:$0xff] %vm33_vm4, %v811_v4  ;;  %v94_v15 = vpop.permute.xlu0 %93  ;;  %v103_v16 = vpop.permute.xlu1 %102  ;;  %vm154_vm4 = vcmask 121960  }
  0x79   :  { %97 = vst.msk [vmem:[#allocation2 + $0x8] sm:$0xff] %vm96_vm5, %v94_v15  ;;  %vm132_vm5 = vcmask 859848  }
  0x7a   :  { %99 = vst.msk [vmem:[#allocation2 + $0x8] sm:$0xff] %vm98_vm6, %v811_v4  ;;  %vm67_vm6 = vcmask 876248  }
  0x7b   :  { %106 = vst.msk [vmem:[#allocation2 + $0x8] sm:$0xff] %vm105_vm7, %v103_v16  ;;  %vm134_vm7 = vcmask 876360  }
  0x7c   :  { %v38_v17 = vpop.permute.xlu0 %37  ;;  %v112_v18 = vpop.permute.xlu1 %111  ;;  %108 = vst.msk [vmem:[#allocation2 + $0x8] sm:$0xff] %vm107_vm8, %v811_v4  ;;  %vm69_vm8 = vcmask 892760  }
  0x7d   :  { %41 = vst.msk [vmem:[#allocation2] sm:$0xff] %vm40_vm9, %v38_v17  ;;  %vm161_vm9 = vcmask 253048  }
  0x7e   :  { %115 = vst.msk [vmem:[#allocation2 + $0x8] sm:$0xff] %vm114_vm10, %v112_v18  ;;  %vm141_vm10 = vcmask 1007448  }
  0x7f   :  { %43 = vst.msk [vmem:[#allocation2] sm:$0xff] %vm42_vm11, %v811_v4  ;;  %vm143_vm11 = vcmask 1023960  }
  0x80   :  { %117 = vst.msk [vmem:[#allocation2 + $0x8] sm:$0xff] %vm116_vm12, %v811_v4  ;;  %v47_v19 = vpop.permute.xlu0 %46  ;;  %v121_v20 = vpop.permute.xlu1 %120  ;;  %vm163_vm12 = vcmask 269560  }
  0x81   :  { %50 = vst.msk [vmem:[#allocation2] sm:$0xff] %vm49_vm13, %v47_v19  ;;  %vm150_vm13 = vcmask 1048552  }
  0x82   :  { %124 = vst.msk [vmem:[#allocation2 + $0x8] sm:$0xff] %vm123_vm14, %v121_v20  ;;  %vm76_vm14 = vcmask 1023848  }
  0x83   :  { %52 = vst.msk [vmem:[#allocation2] sm:$0xff] %vm51_vm15, %v811_v4  ;;  %vm170_vm15 = vcmask 400648  }
  0x84   :  { %126 = vst.msk [vmem:[#allocation2 + $0x8] sm:$0xff] %vm125_vm0, %v811_v4  ;;  %v56_v21 = vpop.permute.xlu0 %55  ;;  %v148_v22 = vpop.permute.xlu1 %147  ;;  %vm78_vm0 = vcmask 1040360  }
  0x85   :  { %59 = vst.msk [vmem:[#allocation2] sm:$0xff] %vm58_vm1, %v56_v21  ;;  %vm172_vm1 = vcmask 556424  }
  0x86   :  { %153 = vst.msk [vmem:[#allocation2 + $0x10] sm:$0xff] %vm152_vm2, %v148_v22  ;;  %vm85_vm2 = vcmask 1048568  }
  0x87   :  { %61 = vst.msk [vmem:[#allocation2] sm:$0xff] %vm60_vm3, %v811_v4  ;;  %vm202_vm3 = vcmask 1039360  }
  0x88   :  { %155 = vst.msk [vmem:[#allocation2 + $0x10] sm:$0xff] %vm154_vm4, %v811_v4  ;;  %v130_v23 = vpop.permute.xlu0 %129  ;;  %v65_v24 = vpop.permute.xlu1 %64  ;;  %vm227_vm4 = vcmask 1031168  }
  0x89   :  { %133 = vst.msk [vmem:[#allocation2 + $0x8] sm:$0xff] %vm132_vm5, %v130_v23  ;;  %vm252_vm5 = vcmask 900096  }
  0x8a   :  { %68 = vst.msk [vmem:[#allocation2] sm:$0xff] %vm67_vm6, %v65_v24  ;;  %vm277_vm6 = vcmask 891904  }
  0x8b   :  { %135 = vst.msk [vmem:[#allocation2 + $0x8] sm:$0xff] %vm134_vm7, %v811_v4  ;;  %vm302_vm7 = vcmask 883712  }
  0x8c   :  { %70 = vst.msk [vmem:[#allocation2] sm:$0xff] %vm69_vm8, %v811_v4  ;;  %v159_v25 = vpop.permute.xlu0 %158  ;;  %v139_v26 = vpop.permute.xlu1 %138  ;;  %vm327_vm8 = vcmask 752640  }
  0x8d   :  { %162 = vst.msk [vmem:[#allocation2 + $0x10] sm:$0xff] %vm161_vm9, %v159_v25  ;;  %vm352_vm9 = vcmask 744448  }
  0x8e   :  { %142 = vst.msk [vmem:[#allocation2 + $0x8] sm:$0xff] %vm141_vm10, %v139_v26  ;;  %vm377_vm10 = vcmask 736256  }
  0x8f   :  { %144 = vst.msk [vmem:[#allocation2 + $0x8] sm:$0xff] %vm143_vm11, %v811_v4  ;;  %vm386_vm11 = vcmask 130048  }
  0x90   :  { %164 = vst.msk [vmem:[#allocation2 + $0x10] sm:$0xff] %vm163_vm12, %v811_v4  ;;  %v74_v27 = vpop.permute.xlu0 %73  ;;  %v168_v28 = vpop.permute.xlu1 %167  ;;  %vm392_vm12 = vcmask 261248  }
  0x91   :  { %151 = vst.msk [vmem:[#allocation2 + $0x8] sm:$0xff] %vm150_vm13, %v148_v22  ;;  %vm397_vm13 = vcmask 392448  }
  0x92   :  { %77 = vst.msk [vmem:[#allocation2] sm:$0xff] %vm76_vm14, %v74_v27  ;;  %vm402_vm14 = vcmask 523648  }
  0x93   :  { %171 = vst.msk [vmem:[#allocation2 + $0x10] sm:$0xff] %vm170_vm15, %v168_v28  ;;  %vm407_vm15 = vcmask 654848  }
  0x94   :  { %79 = vst.msk [vmem:[#allocation2] sm:$0xff] %vm78_vm0, %v811_v4  ;;  %vm412_vm0 = vcmask 786048  }
  0x95   :  { %173 = vst.msk [vmem:[#allocation2 + $0x10] sm:$0xff] %vm172_vm1, %v811_v4  ;;  %vm417_vm1 = vcmask 917248  }
  0x96   :  { %86 = vst.msk [vmem:[#allocation2] sm:$0xff] %vm85_vm2, %v904_v13  ;;  %vm458_vm2 = vcmask 818176  }
  0x98   :  { %v175_v51 = vld [vmem:[#allocation2 + $0x8] sm:$0xff] }
  0x9c   :  { %v924_v29 = vld [vmem:[#allocation2 + $0x10] sm:$0xff] }
  0x9d   :  { %v174_v44 = vld [vmem:[#allocation2] sm:$0xff] }
  0xa1   :  { %v188_v30 = vpop.permute.xlu0 %187  ;;  %v213_v31 = vpop.permute.xlu1 %212 }
  0xa2   :  { %v192_v32 = vmul.f32 %v188_v30, %v924_v29  ;;  %v217_v33 = vmul.f32 %v213_v31, %v924_v29  ;;  %v190_v45 = vmul.f32 %v188_v30, %v174_v44  ;;  %v215_v46 = vmul.f32 %v213_v31, %v174_v44 }
  0xa3   :  { %v216_v52 = vmul.f32 %v213_v31, %v175_v51  ;;  %v191_v54 = vmul.f32 %v188_v30, %v175_v51 }
  0xa4   :  { %200 = vrot.lane.b32.xlu1 %v192_v32, %s833_s1  ;;  %225 = vrot.lane.b32.xlu0 %v217_v33, %s834_s18 }
  0xa6   :  { %v263_v34 = vpop.permute.xlu0 %262  ;;  %v238_v35 = vpop.permute.xlu1 %237 }
  0xa7   :  { %v267_v36 = vmul.f32 %v263_v34, %v924_v29  ;;  %v242_v37 = vmul.f32 %v238_v35, %v924_v29  ;;  %v265_v47 = vmul.f32 %v263_v34, %v174_v44  ;;  %v240_v48 = vmul.f32 %v238_v35, %v174_v44 }
  0xa8   :  { %v266_v55 = vmul.f32 %v263_v34, %v175_v51  ;;  %v241_v56 = vmul.f32 %v238_v35, %v175_v51 }
  0xa9   :  { %275 = vrot.lane.b32.xlu0 %v267_v36, %s835_s19  ;;  %250 = vrot.lane.b32.xlu1 %v242_v37, %s836_s20 }
  0xab   :  { %v288_v38 = vpop.permute.xlu1 %287  ;;  %v338_v40 = vpop.permute.xlu0 %337 }
  0xac   :  { %v292_v39 = vmul.f32 %v288_v38, %v924_v29  ;;  %v342_v41 = vmul.f32 %v338_v40, %v924_v29  ;;  %v290_v49 = vmul.f32 %v288_v38, %v174_v44  ;;  %v340_v53 = vmul.f32 %v338_v40, %v174_v44 }
  0xad   :  { %v291_v59 = vmul.f32 %v288_v38, %v175_v51  ;;  %v341_v61 = vmul.f32 %v338_v40, %v175_v51 }
  0xae   :  { %300 = vrot.lane.b32.xlu1 %v292_v39, %s837_s21 }
  0xb0   :  { %v313_v42 = vpop.permute.xlu1 %312 }
  0xb1   :  { %v317_v43 = vmul.f32 %v313_v42, %v924_v29  ;;  %v315_v50 = vmul.f32 %v313_v42, %v174_v44  ;;  %v316_v57 = vmul.f32 %v313_v42, %v175_v51 }
  0xb2   :  { %350 = vrot.lane.b32.xlu1 %v342_v41, %s838_s22 }
  0xb3   :  { %325 = vrot.lane.b32.xlu0 %v317_v43, %s839_s23 }
  0xb5   :  { %v363_v58 = vpop.permute.xlu1 %362 }
  0xb6   :  { %221 = vrot.lane.b32.xlu1 %v215_v46, %s834_s18  ;;  %v366_v60 = vmul.f32 %v363_v58, %v175_v51  ;;  %v365_v62 = vmul.f32 %v363_v58, %v174_v44  ;;  %v367_v63 = vmul.f32 %v363_v58, %v924_v29 }
  0xb7   :  { %196 = vrot.lane.b32.xlu0 %v190_v45, %s833_s1 }
  0xba   :  { %271 = vrot.lane.b32.xlu1 %v265_v47, %s835_s19  ;;  %v181_v0 = vpop.permute.xlu1 %180 }
  0xbb   :  { %246 = vrot.lane.b32.xlu0 %v240_v48, %s836_s20  ;;  %v185_v15 = vmul.f32 %v181_v0, %v924_v29  ;;  %v183_v22 = vmul.f32 %v181_v0, %v174_v44  ;;  %v184_v23 = vmul.f32 %v181_v0, %v175_v51 }
  0xbe   :  { %321 = vrot.lane.b32.xlu1 %v315_v50, %s839_s23 }
  0xbf   :  { %296 = vrot.lane.b32.xlu0 %v290_v49, %s837_s21 }
  0xc2   :  { %223 = vrot.lane.b32.xlu1 %v216_v52, %s834_s18 }
  0xc3   :  { %346 = vrot.lane.b32.xlu0 %v340_v53, %s838_s22 }
  0xc6   :  { %273 = vrot.lane.b32.xlu1 %v266_v55, %s835_s19 }
  0xc7   :  { %198 = vrot.lane.b32.xlu0 %v191_v54, %s833_s1 }
  0xca   :  { %323 = vrot.lane.b32.xlu1 %v316_v57, %s839_s23 }
  0xcb   :  { %248 = vrot.lane.b32.xlu0 %v241_v56, %s836_s20 }
  0xce   :  { %373 = vrot.lane.b32.xlu1 %v366_v60, %s840_s24 }
  0xcf   :  { %298 = vrot.lane.b32.xlu0 %v291_v59, %s837_s21 }
  0xd2   :  { %371 = vrot.lane.b32.xlu1 %v365_v62, %s840_s24 }
  0xd3   :  { %348 = vrot.lane.b32.xlu0 %v341_v61, %s838_s22 }
  0xd7   :  { %375 = vrot.lane.b32.xlu0 %v367_v63, %s840_s24 }
 0x116   :  { %v201_v1 = vpop.permute.xlu1 %200  ;;  %v226_v5 = vpop.permute.xlu0 %225 }
 0x117   :  { %v210_v18 = vadd.f32 %v201_v1, %v185_v15 }
 0x119   :  { %v235_v21 = vadd.f32 %v226_v5, %v210_v18 }
 0x11b   :  { %v251_v4 = vpop.permute.xlu1 %250  ;;  %v276_v6 = vpop.permute.xlu0 %275 }
 0x11c   :  { %v260_v26 = vadd.f32 %v251_v4, %v235_v21 }
 0x11e   :  { %v285_v37 = vadd.f32 %v276_v6, %v260_v26 }
 0x120   :  { %v301_v8 = vpop.permute.xlu1 %300 }
 0x121   :  { %v310_v48 = vadd.f32 %v301_v8, %v285_v37 }
 0x124   :  { %v952_v9 = vpop.permute.xlu1 %350 }
 0x125   :  { %v326_v10 = vpop.permute.xlu0 %325 }
 0x126   :  { %v335_v52 = vadd.f32 %v326_v10, %v310_v48 }
 0x128   :  { %v222_v11 = vpop.permute.xlu1 %221  ;;  %v360_v63 = vadd.f32 %v952_v9, %v335_v52 }
 0x129   :  { %v197_v12 = vpop.permute.xlu0 %196 }
 0x12c   :  { %v272_v13 = vpop.permute.xlu1 %271 }
 0x12d   :  { %v247_v14 = vpop.permute.xlu0 %246 }
 0x130   :  { %v322_v16 = vpop.permute.xlu1 %321 }
 0x131   :  { %v297_v17 = vpop.permute.xlu0 %296 }
 0x134   :  { %v224_v19 = vpop.permute.xlu1 %223 }
 0x135   :  { %v347_v20 = vpop.permute.xlu0 %346  ;;  %v228_v32 = vsel %vm227_vm4, %v222_v11, %v224_v19  ;;  %v229_v29 = vsel %vm227_vm4, %v224_v19, %v226_v5  ;;  %vm427_vm4 = vcmask 1048448  }
 0x138   :  { %v274_v24 = vpop.permute.xlu1 %273 }
 0x139   :  { %v199_v25 = vpop.permute.xlu0 %198  ;;  %v278_v42 = vsel %vm277_vm6, %v272_v13, %v274_v24  ;;  %v279_v43 = vsel %vm277_vm6, %v274_v24, %v276_v6 }
 0x13a   :  { %v203_v27 = vsel %vm202_vm3, %v197_v12, %v199_v25  ;;  %v204_v28 = vsel %vm202_vm3, %v199_v25, %v201_v1  ;;  %vm424_vm3 = vcmask 932864  }
 0x13b   :  { %v208_v30 = vadd.f32 %v203_v27, %v183_v22  ;;  %v209_v31 = vadd.f32 %v204_v28, %v184_v23 }
 0x13c   :  { %v324_v33 = vpop.permute.xlu1 %323 }
 0x13d   :  { %v234_v34 = vadd.f32 %v229_v29, %v209_v31  ;;  %v249_v35 = vpop.permute.xlu0 %248  ;;  %v233_v36 = vadd.f32 %v228_v32, %v208_v30  ;;  %v328_v53 = vsel %vm327_vm8, %v322_v16, %v324_v33  ;;  %v329_v59 = vsel %vm327_vm8, %v324_v33, %v326_v10 }
 0x13e   :  { %v253_v38 = vsel %vm252_vm5, %v247_v14, %v249_v35  ;;  %v254_v39 = vsel %vm252_vm5, %v249_v35, %v251_v4  ;;  %vm490_vm5 = vcmask 1043456  }
 0x13f   :  { %v258_v40 = vadd.f32 %v253_v38, %v233_v36  ;;  %v259_v41 = vadd.f32 %v254_v39, %v234_v34 }
 0x140   :  { %v374_v44 = vpop.permute.xlu1 %373 }
 0x141   :  { %v284_v45 = vadd.f32 %v279_v43, %v259_v41  ;;  %v299_v46 = vpop.permute.xlu0 %298  ;;  %v283_v47 = vadd.f32 %v278_v42, %v258_v40 }
 0x142   :  { %v303_v49 = vsel %vm302_vm7, %v297_v17, %v299_v46  ;;  %v304_v50 = vsel %vm302_vm7, %v299_v46, %v301_v8 }
 0x143   :  { %v308_v51 = vadd.f32 %v303_v49, %v283_v47  ;;  %v309_v54 = vadd.f32 %v304_v50, %v284_v45 }
 0x144   :  { %v372_v55 = vpop.permute.xlu1 %371 }
 0x145   :  { %v349_v56 = vpop.permute.xlu0 %348  ;;  %v333_v57 = vadd.f32 %v328_v53, %v308_v51  ;;  %v378_v61 = vsel %vm377_vm10, %v372_v55, %v374_v44  ;;  %v334_v62 = vadd.f32 %v329_v59, %v309_v54  ;;  %v508_v59 = vld [vmem:[%s994_s2] sm:$0xf]  ;;  %s853_s2 = smov [#allocation4]  }
 0x146   :  { %v353_v58 = vsel %vm352_vm9, %v347_v20, %v349_v56  ;;  %v354_v0 = vsel %vm352_vm9, %v349_v56, %v952_v9 }
 0x147   :  { %v358_v60 = vadd.f32 %v353_v58, %v333_v57  ;;  %v359_v8 = vadd.f32 %v354_v0, %v334_v62  ;;  %v510_v62 = vld [vmem:[%s995_s3] sm:$0xf]  ;;  %s707_s3 = sshll.u32 %s853_s2, 4  ;;  %s708_s3 = int_to_ptr.vmem [resolvable:$true] %s707_s3 }
 0x148   :  { %p788_p1 = scmp.lt.s32.totalorder %s708_s3, %s708_s3 }
 0x149   :  { %v383_v1 = vadd.f32 %v378_v61, %v358_v60  ;;  %v376_v4 = vpop.permute.xlu0 %375 }
 0x14a   :  { %v385_v5 = vadd.f32 %v376_v4, %v360_v63  ;;  %v379_v6 = vsel %vm377_vm10, %v374_v44, %v376_v4  ;;  %v540_v4 = vld [vmem:[%s997_s5] sm:$0xff] }
 0x14b   :  { %389 = vrot.lane.b32.xlu1 %v383_v1, %s834_s18  ;;  %387 = vst.msk [vmem:[#allocation3] sm:$0xff] %vm386_vm11, %v383_v1  ;;  %v384_v10 = vadd.f32 %v379_v6, %v359_v8 }
 0x14c   :  { %456 = vrot.lane.b32.xlu0 %v385_v5, %s841_s25 }
 0x14f   :  { %394 = vrot.lane.b32.xlu1 %v383_v1, %s842_s26 }
 0x150   :  { %429 = vrot.lane.b32.xlu0 %v384_v10, %s843_s27 }
 0x153   :  { %399 = vrot.lane.b32.xlu1 %v383_v1, %s844_s28 }
 0x154   :  { %433 = vrot.lane.b32.xlu0 %v384_v10, %s836_s20 }
 0x157   :  { %404 = vrot.lane.b32.xlu1 %v383_v1, %s845_s29 }
 0x158   :  { %437 = vrot.lane.b32.xlu0 %v384_v10, %s837_s21 }
 0x15b   :  { %409 = vrot.lane.b32.xlu1 %v383_v1, %s846_s30 }
 0x15c   :  { %441 = vrot.lane.b32.xlu0 %v384_v10, %s847_s0 }
 0x15f   :  { %454 = vrot.lane.b32.xlu1 %v384_v10, %s841_s25 }
 0x160   :  { %445 = vrot.lane.b32.xlu0 %v384_v10, %s848_s7 }
 0x163   :  { %414 = vrot.lane.b32.xlu1 %v383_v1, %s849_s8 }
 0x164   :  { %449 = vrot.lane.b32.xlu0 %v384_v10, %s850_s9 }
 0x167   :  { %422 = vrot.lane.b32.xlu1 %v384_v10, %s851_s10 }
 0x168   :  { %420 = vrot.lane.b32.xlu0 %v383_v1, %s851_s10  ;;  %v539_v1 = vld [vmem:[%s996_s4] sm:$0xff]  ;;  %s783_s4 = scalar_lea.vmem %s708_s3, 512 }
 0x169   :  { %p784_p0 = scmp.ne.s32.totalorder %s708_s3, %s783_s4  ;;  %p789_p2 = scmp.lt.s32.totalorder %s783_s4, %s783_s4 }
 0x16b   :  { %p790_p3 = por %p789_p2, %p788_p1 }
 0x16c   :  { %462 = vrot.lane.b32.xlu0 %v385_v5, %s852_s11 }
 0x16d   :  { %p791_p4 = pnand %p790_p3, %p784_p0 }
 0x1bd   :  { %v390_v9 = vpop.permute.xlu1 %389 }
 0x1be   :  { %v457_v11 = vpop.permute.xlu0 %456  ;;  %393 = vst.msk [vmem:[#allocation3] sm:$0xff] %vm392_vm12, %v390_v9  ;;  %v543_v9 = vlaneseq }
 0x1c1   :  { %v395_v12 = vpop.permute.xlu1 %394 }
 0x1c2   :  { %v430_v13 = vpop.permute.xlu0 %429  ;;  %398 = vst.msk [vmem:[#allocation3] sm:$0xff] %vm397_vm13, %v395_v12 }
 0x1c3   :  { %432 = vst.msk [vmem:[#allocation3 + $0x8] sm:$0xff] %vm386_vm11, %v430_v13 }
 0x1c5   :  { %v400_v14 = vpop.permute.xlu1 %399 }
 0x1c6   :  { %403 = vst.msk [vmem:[#allocation3] sm:$0xff] %vm402_vm14, %v400_v14  ;;  %v434_v15 = vpop.permute.xlu0 %433 }
 0x1c7   :  { %436 = vst.msk [vmem:[#allocation3 + $0x8] sm:$0xff] %vm392_vm12, %v434_v15 }
 0x1c9   :  { %v405_v16 = vpop.permute.xlu1 %404 }
 0x1ca   :  { %408 = vst.msk [vmem:[#allocation3] sm:$0xff] %vm407_vm15, %v405_v16  ;;  %v438_v17 = vpop.permute.xlu0 %437 }
 0x1cb   :  { %440 = vst.msk [vmem:[#allocation3 + $0x8] sm:$0xff] %vm397_vm13, %v438_v17 }
 0x1cd   :  { %v410_v18 = vpop.permute.xlu1 %409 }
 0x1ce   :  { %413 = vst.msk [vmem:[#allocation3] sm:$0xff] %vm412_vm0, %v410_v18  ;;  %v442_v19 = vpop.permute.xlu0 %441 }
 0x1cf   :  { %444 = vst.msk [vmem:[#allocation3 + $0x8] sm:$0xff] %vm402_vm14, %v442_v19 }
 0x1d1   :  { %v455_v20 = vpop.permute.xlu1 %454 }
 0x1d2   :  { %v446_v21 = vpop.permute.xlu0 %445  ;;  %v459_v24 = vsel %vm458_vm2, %v455_v20, %v457_v11 }
 0x1d3   :  { %448 = vst.msk [vmem:[#allocation3 + $0x8] sm:$0xff] %vm407_vm15, %v446_v21 }
 0x1d5   :  { %v415_v22 = vpop.permute.xlu1 %414 }
 0x1d6   :  { %418 = vst.msk [vmem:[#allocation3] sm:$0xff] %vm417_vm1, %v415_v22  ;;  %v450_v23 = vpop.permute.xlu0 %449 }
 0x1d7   :  { %452 = vst.msk [vmem:[#allocation3 + $0x8] sm:$0xff] %vm412_vm0, %v450_v23 }
 0x1d8   :  { %461 = vst.msk [vmem:[#allocation3 + $0x8] sm:$0xff] %vm417_vm1, %v459_v24 }
 0x1d9   :  { %v423_v25 = vpop.permute.xlu1 %422 }
 0x1da   :  { %v421_v26 = vpop.permute.xlu0 %420 }
 0x1db   :  { %v425_v27 = vsel %vm424_vm3, %v421_v26, %v423_v25 }
 0x1dc   :  { %428 = vst.msk [vmem:[#allocation3] sm:$0xff] %vm427_vm4, %v425_v27 }
 0x1de   :  { %v463_v28 = vpop.permute.xlu0 %462 }
 0x1df   :  { %465 = vst.msk [vmem:[#allocation3 + $0x8] sm:$0xff] %vm427_vm4, %v463_v28 }
 0x1e3   :  { %v468_v30 = vld [vmem:[#allocation3] sm:$0xf0]  ;;  %v466_v31 = vld [vmem:[#allocation3] sm:$0xf] }
 0x1e4   :  { %v474_v32 = vrot.slane %v468_v30, 4  ;;  %v480_v29 = vmul.f32 %v468_v30, %v468_v30  ;;  %v470_v38 = vmul.f32 %v466_v31, %v466_v31 }
 0x1e6   :  { %v467_v33 = vld [vmem:[#allocation3 + $0x8] sm:$0xf]  ;;  %v469_v34 = vld [vmem:[#allocation3 + $0x8] sm:$0xf0]  ;;  %v484_v35 = vrot.slane %v480_v29, 4  ;;  %v478_v37 = vadd.f32 %v474_v32, %v466_v31 }
 0x1e7   :  { %v475_v36 = vrot.slane %v469_v34, 4  ;;  %v481_v39 = vmul.f32 %v469_v34, %v469_v34  ;;  %v471_v41 = vmul.f32 %v467_v33, %v467_v33 }
 0x1e8   :  { %v488_v43 = vadd.f32 %v484_v35, %v470_v38  ;;  %v491_v44 = vsel %vm490_vm5, %v478_v37, 0.0 }
 0x1e9   :  { %v479_v40 = vadd.f32 %v475_v36, %v467_v33  ;;  %v485_v42 = vrot.slane %v481_v39, 4 }
 0x1ea   :  { %v496_v48 = vsel %vm490_vm5, %v488_v43, 0.0 }
 0x1eb   :  { %v492_v45 = vsel %vm490_vm5, %v479_v40, 0.0  ;;  %v489_v46 = vadd.f32 %v485_v42, %v471_v41 }
 0x1ec   :  { %v493_v47 = vadd.f32 %v492_v45, %v491_v44 }
 0x1ed   :  { %v497_v49 = vsel %vm490_vm5, %v489_v46, 0.0 }
 0x1ee   :  { %494 = vadd.xlane.f32.xlu1 %v493_v47  ;;  %v498_v50 = vadd.f32 %v497_v49, %v496_v48 }
 0x1f0   :  { %499 = vadd.xlane.f32.xlu0 %v498_v50 }
 0x27b   :  { %v495_v51 = vpop.xlane.xlu1 %494 }
 0x27c   :  { %v501_v52 = vmul.f32 0.001953125, %v495_v51 }
 0x27d   :  { %v500_v53 = vpop.xlane.xlu0 %499 }
 0x27e   :  { %v503_v54 = vmul.f32 %v501_v52, %v501_v52  ;;  %v502_v55 = vmul.f32 0.001953125, %v500_v53 }
 0x280   :  { %v504_v56 = vsub.f32 %v502_v55, %v503_v54 }
 0x282   :  { %v505_v57 = vmax.f32 %v504_v56, 0.0 }
 0x284   :  { %v506_v58 = vadd.f32 1e-05, %v505_v57 }
 0x286   :  { %781 = vrsqrt.f32 %v506_v58 }
 0x290   :  { %v782_v60 = vpop.eup %781 }
 0x291   :  { %v509_v61 = vmul.f32 %v782_v60, %v508_v59 }
 0x293   :  { %515 = vperm.xlu0 %776, %v509_v61   ;;  %v511_v63 = vmul.f32 %v509_v61, %v501_v52 }
 0x295   :  { %v512_v0 = vsub.f32 %v510_v62, %v511_v63 }
 0x297   :  { %522 = vperm.xlu1 %775, %v512_v0   ;;  %780 = vset.pattern.permute.xlu0 %v827_v7 }
 0x29b   :  { %555 = vperm.xlu1 %775, %v539_v1  }
 0x29f   :  { %562 = vperm.xlu1 %775, %v540_v4  }
 0x2a3   :  { %777 = vset.pattern.permute.xlu1 %v810_v3 }
 0x2a4   :  { %581 = vperm.xlu1 %777, %v539_v1  }
 0x2a8   :  { %778 = vset.pattern.permute.xlu1 %v809_v2  ;;  %v544_v2 = vshrl.u32 %v543_v9, 7 }
 0x2a9   :  { %602 = vperm.xlu1 %778, %v539_v1  }
 0x2aa   :  { %v549_v19 = vsub.s32 1, %v544_v2 }
 0x2ad   :  { %779 = vset.pattern.permute.xlu1 %v827_v7  ;;  %v545_v7 = vsub.s32 0, %v544_v2 }
 0x2ae   :  { %623 = vperm.xlu1 %779, %v539_v1  }
 0x312   :  { %v516_v5 = vpop.permute.xlu0 %515 }
 0x313   :  { %v529_v6 = vrot.slane %v516_v5, 4  ;;  %v518_v8 = vmul.f32 %v516_v5, %v466_v31  ;;  %v519_v10 = vmul.f32 %v516_v5, %v467_v33 }
 0x315   :  { %v531_v11 = vmul.f32 %v529_v6, %v468_v30  ;;  %v532_v13 = vmul.f32 %v529_v6, %v469_v34 }
 0x316   :  { %v523_v12 = vpop.permute.xlu1 %522 }
 0x317   :  { %v525_v14 = vadd.f32 %v523_v12, %v518_v8  ;;  %v526_v15 = vadd.f32 %v523_v12, %v519_v10  ;;  %v533_v16 = vrot.slane %v523_v12, 4 }
 0x319   :  { %527 = vst [vmem:[#allocation3] sm:$0xf] %v525_v14  ;;  %528 = vst [vmem:[#allocation3 + $0x8] sm:$0xf] %v526_v15  ;;  %v535_v3 = vadd.f32 %v533_v16, %v531_v11  ;;  %v536_v17 = vadd.f32 %v533_v16, %v532_v13 }
 0x31a   :  { %v556_v18 = vpop.permute.xlu1 %555 }
 0x31b   :  { %537 = vst [vmem:[#allocation3] sm:$0xf0] %v535_v3  ;;  %538 = vst [vmem:[#allocation3 + $0x8] sm:$0xf0] %v536_v17 }
 0x31e   :  { %v563_v20 = vpop.permute.xlu1 %562 }
 0x320   :  { %v541_v21 = vld [vmem:[#allocation3] ss:$8 sm:$0x3]  ;;  %v568_v22 = vld [vmem:[#allocation3 + $0x1] ss:$8 sm:$0x3] }
 0x321   :  { %v546_v23 = vrot.slane %v541_v21, %v545_v7  ;;  %v550_v24 = vrot.slane %v541_v21, %v549_v19  ;;  %v589_v25 = vld [vmem:[#allocation3 + $0x2] ss:$8 sm:$0x3]  ;;  %v573_v27 = vrot.slane %v568_v22, %v545_v7  ;;  %v577_v28 = vrot.slane %v568_v22, %v549_v19  ;;  %v610_v57 = vld [vmem:[#allocation3 + $0x3] ss:$8 sm:$0x3] }
 0x322   :  { %v631_v26 = vld [vmem:[#allocation3 + $0x4] ss:$8 sm:$0x3]  ;;  %v648_v30 = vld [vmem:[#allocation3 + $0x5] ss:$8 sm:$0x3]  ;;  %v594_v39 = vrot.slane %v589_v25, %v545_v7  ;;  %v598_v40 = vrot.slane %v589_v25, %v549_v19  ;;  %v615_v63 = vrot.slane %v610_v57, %v545_v7  ;;  %v619_v0 = vrot.slane %v610_v57, %v549_v19 }
 0x323   :  { %v636_v31 = vrot.slane %v631_v26, %v545_v7  ;;  %v640_v32 = vrot.slane %v631_v26, %v549_v19  ;;  %v558_v29 = vmul.f32 %v556_v18, %v546_v23  ;;  %v559_v33 = vmul.f32 %v556_v18, %v550_v24  ;;  %v582_v34 = vpop.permute.xlu1 %581  ;;  %v665_v41 = vld [vmem:[#allocation3 + $0x6] ss:$8 sm:$0x3]  ;;  %v682_v58 = vld [vmem:[#allocation3 + $0x7] ss:$8 sm:$0x3] }
 0x324   :  { %v653_v35 = vrot.slane %v648_v30, %v545_v7  ;;  %v657_v36 = vrot.slane %v648_v30, %v549_v19  ;;  %v584_v44 = vmul.f32 %v582_v34, %v573_v27  ;;  %v585_v45 = vmul.f32 %v582_v34, %v577_v28 }
 0x325   :  { %v643_v37 = vmul.f32 %v636_v31, %v556_v18  ;;  %v644_v38 = vmul.f32 %v640_v32, %v556_v18  ;;  %v565_v42 = vadd.f32 %v563_v20, %v558_v29  ;;  %v566_v43 = vadd.f32 %v563_v20, %v559_v33 }
 0x326   :  { %v660_v48 = vmul.f32 %v653_v35, %v582_v34  ;;  %v661_v49 = vmul.f32 %v657_v36, %v582_v34  ;;  %v670_v50 = vrot.slane %v665_v41, %v545_v7  ;;  %v674_v51 = vrot.slane %v665_v41, %v549_v19 }
 0x327   :  { %v645_v46 = vadd.f32 %v643_v37, %v563_v20  ;;  %v646_v47 = vadd.f32 %v644_v38, %v563_v20  ;;  %v586_v61 = vadd.f32 %v584_v44, %v565_v42  ;;  %v587_v62 = vadd.f32 %v585_v45, %v566_v43 }
 0x328   :  { %v603_v52 = vpop.permute.xlu1 %602  ;;  %v687_v1 = vrot.slane %v682_v58, %v545_v7  ;;  %v691_v4 = vrot.slane %v682_v58, %v549_v19 }
 0x329   :  { %v662_v53 = vadd.f32 %v660_v48, %v645_v46  ;;  %v663_v54 = vadd.f32 %v661_v49, %v646_v47  ;;  %v605_v55 = vmul.f32 %v603_v52, %v594_v39  ;;  %v606_v56 = vmul.f32 %v603_v52, %v598_v40 }
 0x32a   :  { %v677_v59 = vmul.f32 %v670_v50, %v603_v52  ;;  %v678_v60 = vmul.f32 %v674_v51, %v603_v52 }
 0x32b   :  { %v607_v5 = vadd.f32 %v605_v55, %v586_v61  ;;  %v608_v6 = vadd.f32 %v606_v56, %v587_v62 }
 0x32c   :  { %v679_v8 = vadd.f32 %v677_v59, %v662_v53  ;;  %v680_v10 = vadd.f32 %v678_v60, %v663_v54 }
 0x32d   :  { %v624_v9 = vpop.permute.xlu1 %623 }
 0x32e   :  { %v626_v11 = vmul.f32 %v624_v9, %v615_v63  ;;  %v627_v12 = vmul.f32 %v624_v9, %v619_v0  ;;  %v694_v13 = vmul.f32 %v687_v1, %v624_v9  ;;  %v695_v14 = vmul.f32 %v691_v4, %v624_v9 }
 0x330   :  { %v628_v15 = vadd.f32 %v626_v11, %v607_v5  ;;  %v629_v16 = vadd.f32 %v627_v12, %v608_v6  ;;  %v696_v3 = vadd.f32 %v694_v13, %v679_v8  ;;  %v697_v17 = vadd.f32 %v695_v14, %v680_v10 }
 0x332   :  { %698 = vst [vmem:[#allocation4] sm:$0xff] %v628_v15  ;;  %699 = vst [vmem:[#allocation4 + $0x8] sm:$0xff] %v629_v16 }
 0x333   :  { %700 = vst [vmem:[#allocation4 + $0x10] sm:$0xff] %v696_v3  ;;  %701 = vst [vmem:[#allocation4 + $0x18] sm:$0xff] %v697_v17 }
 0x334   :  { %794 = shalt.err (!%p791_p4)
}
 0x335   :  { %s795_s20 = scalar_lea.hbm %s998_s6, 512 }
 0x336   :  { %p796_p5 = scmp.ne.s32.totalorder %s998_s6, %s795_s20  ;;  %p799_p6 = scmp.lt.u32.totalorder %s795_s20, %s998_s6 }
 0x338   :  { %p801_p7 = pnand %p799_p6, %p796_p5 }
 0x33a   :  { %804 = shalt.err (!%p801_p7)
}
 0x33b   :  { %s854_s25 = smov 256   ;;  %s855_s26 = smov 16  }
 0x33c   :  { %713 = dma.vmem_to_hbm [thread:$0]  %s708_s3, 512, %s998_s6, [#allocation5], %s854_s25, %s854_s25, %s855_s26  }
 0x33d   :  { %805 = dma.done.wait [#allocation5], 512  }
 0x33e   :  { %806 = vsyncadd [#allocation5], 4294966784 }
 0x33f   :  { %717 = vsyncpa [#allocation5], 1 }

</bundles_post_ra>
